<compile_context>
chip_gen: v6e
topology: v6e:2x2x1
jax: 0.10.0
libtpu: 0.0.40
codegen_flags: <defaults>
</compile_context>

<pallas_src>
import jax
import jax.numpy as jnp
from jax.experimental import pallas as pl
from jax.experimental.pallas import tpu as pltpu

# ----------------------------- configuration -----------------------------------
B = 2
IN_CH = 16
OUT_CH = 16
H = 8
W = 16                      # must equal IN_CH == OUT_CH (LayerNorm-over-NCHW quirk)
L = H * W                   # 128: full lane occupancy per batch slab
NUM_HEADS = 8
HEAD_DIM = IN_CH // NUM_HEADS        # 2
HIDDEN = IN_CH * 4                   # 64
EPS = 1e-5
SCALE = 1000000.0
INV_SCALE = 1.0 / SCALE
EPS1 = EPS / (SCALE * SCALE)         # norm1 sees x*SCALE in the reference;
                                     # dividing through gives this effective eps.

assert W == IN_CH == OUT_CH, "LayerNorm-over-NCHW quirk requires W == C_in == C_out"
assert HEAD_DIM == 2, "kernel statically unrolls the two head_dim components"


# ------------------------------- Pallas kernel ----------------------------------
def _block_kernel(x_ref, wqkv_ref, wo_ref, w1_ref, b1_ref, w2_ref, b2_ref, o_ref):
    C, N = IN_CH, NUM_HEADS

    # ---- per-W-group averaging matrix, generated in VMEM (no HBM DMA) --------
    # (i // W == j // W)  <=>  (i ^ j) < W   for W a power of two.
    ri = jax.lax.broadcasted_iota(jnp.int32, (L, L), 0)
    ci = jax.lax.broadcasted_iota(jnp.int32, (L, L), 1)
    pmat = jnp.where((ri ^ ci) < W, jnp.float32(1.0 / W), jnp.float32(0.0))  # (L, L)

    x0 = x_ref[0]                                   # (C, L) batch-0 slab, f32
    x1 = x_ref[1]                                   # (C, L) batch-1 slab, f32

    # ---- norm1: segmented LayerNorm, fused mean / second-moment matmul -------
    xs = jnp.concatenate([x0, x0 * x0, x1, x1 * x1], axis=0)        # (4C, L)
    st = jnp.dot(xs, pmat, preferred_element_type=jnp.float32)      # (4C, L)
    mu0, ex0 = st[0:C], st[C:2 * C]
    mu1, ex1 = st[2 * C:3 * C], st[3 * C:4 * C]
    xn0 = (x0 - mu0) * jax.lax.rsqrt(ex0 - mu0 * mu0 + EPS1)
    xn1 = (x1 - mu1) * jax.lax.rsqrt(ex1 - mu1 * mu1 + EPS1)
    xn = jnp.concatenate([xn0, xn1], axis=1)        # (C, 2L) lane-merged batches

    # ---- multi-head attention over heads (independent per spatial lane) ------
    # fused Q/K/V projection (3C, C) @ (C, 2L); rows grouped by head_dim
    # component in the wrapper so every slice below is 8-aligned & contiguous.
    qkv = jnp.dot(wqkv_ref[...], xn.astype(jnp.bfloat16),
                  preferred_element_type=jnp.float32)               # (3C, 2L)
    q0, q1 = qkv[0:N], qkv[N:2 * N]                 # 1/sqrt(head_dim) pre-folded
    k0, k1 = qkv[C:C + N], qkv[C + N:C + 2 * N]
    v0, v1 = qkv[2 * C:2 * C + N], qkv[2 * C + N:2 * C + 2 * N]

    # logits bounded (|w|<=0.1, LN'd inputs) -> exp without max-subtraction
    s = q0[:, None, :] * k0[None, :, :] + q1[:, None, :] * k1[None, :, :]
    p = jnp.exp(s)                                                  # (N, N, 2L)
    inv = pl.reciprocal(jnp.sum(p, axis=1), approx=True)            # (N, 2L)
    ctx0 = jnp.sum(p * v0[None, :, :], axis=1) * inv                # (N, 2L)
    ctx1 = jnp.sum(p * v1[None, :, :], axis=1) * inv

    attn = (jnp.dot(wo_ref[0], ctx0.astype(jnp.bfloat16),
                    preferred_element_type=jnp.float32)
            + jnp.dot(wo_ref[1], ctx1.astype(jnp.bfloat16),
                      preferred_element_type=jnp.float32))          # (C, 2L)

    x2 = jnp.maximum(xn + attn, 0.0)                # residual + ReLU

    # ---- FFN ------------------------------------------------------------------
    hdn = jnp.maximum(
        jnp.dot(w1_ref[...], x2.astype(jnp.bfloat16),
                preferred_element_type=jnp.float32) + b1_ref[...], 0.0)  # (HID, 2L)
    y = (jnp.dot(w2_ref[...], hdn.astype(jnp.bfloat16),
                 preferred_element_type=jnp.float32) + b2_ref[...])      # (C, 2L)

    # ---- norm2 + identity shortcut + ReLU + floor, per slab (lane-dense) ------
    y0, y1 = y[:, :L], y[:, L:]
    ys = jnp.concatenate([y0, y0 * y0, y1, y1 * y1], axis=0)        # (4C, L)
    st2 = jnp.dot(ys, pmat, preferred_element_type=jnp.float32)
    m0, e0 = st2[0:C], st2[C:2 * C]
    m1, e1 = st2[2 * C:3 * C], st2[3 * C:4 * C]
    yn0 = (y0 - m0) * jax.lax.rsqrt(e0 - m0 * m0 + EPS)
    yn1 = (y1 - m1) * jax.lax.rsqrt(e1 - m1 * m1 + EPS)
    o_ref[0] = jnp.floor(jnp.maximum(yn0 + x0 * SCALE, 0.0) * INV_SCALE).astype(o_ref.dtype)
    o_ref[1] = jnp.floor(jnp.maximum(yn1 + x1 * SCALE, 0.0) * INV_SCALE).astype(o_ref.dtype)


def _full_spec(shape):
    zeros = (0,) * len(shape)
    return pl.BlockSpec(shape, lambda i: zeros)


# -------------------- one-time weight preprocessing (hoisted) --------------------
def prepare_params(params):
    """Fuse/permute/cast the weights once, outside the per-call path."""
    C, N, D = IN_CH, NUM_HEADS, HEAD_DIM
    # permutation that groups projection rows by head_dim component:
    # perm[d*N + n] = n*D + d
    perm = jnp.array([n * D + d for d in range(D) for n in range(N)], jnp.int32)

    wq = params['W_Q'].reshape(C, C).T[perm] * (1.0 / D ** 0.5)   # fold attn scale
    wk = params['W_K'].reshape(C, C).T[perm]
    wv = params['W_V'].reshape(C, C).T[perm]
    wqkv = jnp.concatenate([wq, wk, wv], axis=0).astype(jnp.bfloat16)   # (3C, C)

    wo = params['W_O'].T[:, perm]                                        # (C, C)
    wo_d = jnp.stack([wo[:, :N], wo[:, N:]], axis=0).astype(jnp.bfloat16)  # (D, C, N)

    return dict(
        wqkv=wqkv,
        wo=wo_d,
        w1=params['W1'].astype(jnp.bfloat16),                 # (HID, C)
        b1=params['b1'].reshape(-1, 1).astype(jnp.float32),   # (HID, 1)
        w2=params['W2'].astype(jnp.bfloat16),                 # (C_out, HID)
        b2=params['b2'].reshape(-1, 1).astype(jnp.float32),   # (C_out, 1)
    )


@jax.jit
def transformer_conv_block(x_nchw, prep):
    x_bcl = x_nchw.reshape(B, IN_CH, L)             # free reshape, lane-dense slabs
    out = pl.pallas_call(
        _block_kernel,
        out_shape=jax.ShapeDtypeStruct((B, OUT_CH, L), jnp.float32),
        grid=(1,),                                  # single invocation (no step overhead)
        in_specs=[
            _full_spec((B, IN_CH, L)),              # x, both slabs
            _full_spec((3 * IN_CH, IN_CH)),         # fused QKV weight (bf16)
            _full_spec((HEAD_DIM, OUT_CH, NUM_HEADS)),  # W_O split by component (bf16)
            _full_spec((HIDDEN, IN_CH)),            # ffn1.weight (bf16)
            _full_spec((HIDDEN, 1)),                # ffn1.bias
            _full_spec((OUT_CH, HIDDEN)),           # ffn2.weight (bf16)
            _full_spec((OUT_CH, 1)),                # ffn2.bias
        ],
        out_specs=_full_spec((B, OUT_CH, L)),
        compiler_params=pltpu.CompilerParams(
            dimension_semantics=("arbitrary",)),
    )(x_bcl, prep['wqkv'], prep['wo'], prep['w1'], prep['b1'], prep['w2'], prep['b2'])
    return out.reshape(B, OUT_CH, H, W)             # free reshape back to NCHW


# --------------------------- pure-JAX reference ----------------------------------
def reference_forward(x, params):
    x = x * SCALE
    identity = x
    Bx, C, Hx, Wx = x.shape

    def ln(t):
        mu = jnp.mean(t, axis=-1, keepdims=True)
        var = jnp.var(t, axis=-1, keepdims=True)
        return (t - mu) / jnp.sqrt(var + EPS)

    xn = ln(x)
    xt = jnp.transpose(xn, (0, 2, 3, 1)).reshape(Bx * Hx * Wx, C)
    WQr = params['W_Q'].reshape(-1, HEAD_DIM * NUM_HEADS)
    WKr = params['W_K'].reshape(-1, HEAD_DIM * NUM_HEADS)
    WVr = params['W_V'].reshape(-1, HEAD_DIM * NUM_HEADS)
    Q = (xt @ WQr).reshape(Bx, Hx, Wx, NUM_HEADS, HEAD_DIM).transpose(0, 3, 1, 2, 4)
    K = (xt @ WKr).reshape(Bx, Hx, Wx, NUM_HEADS, HEAD_DIM).transpose(0, 3, 1, 2, 4)
    V = (xt @ WVr).reshape(Bx, Hx, Wx, NUM_HEADS, HEAD_DIM).transpose(0, 3, 1, 2, 4)
    S = jnp.einsum('bnhwd,bmhwd->bnmhw', Q, K) / (HEAD_DIM ** 0.5)
    A = jax.nn.softmax(S, axis=2)
    xa = jnp.einsum('bnmhw,bmhwd->bnhwd', A, V)
    xa = xa.transpose(0, 2, 3, 1, 4).reshape(Bx, Hx, Wx, -1)
    xa = (xa @ params['W_O']).transpose(0, 3, 1, 2)
    x2 = jax.nn.relu(xn + xa)
    xt2 = jnp.transpose(x2, (0, 2, 3, 1))
    hdn = jax.nn.relu(xt2 @ params['W1'].T + params['b1'])
    y = hdn @ params['W2'].T + params['b2']
    y = jnp.transpose(y, (0, 3, 1, 2))
    yn = ln(y)
    out = jax.nn.relu(yn + identity)                # shortcut == identity here
    return jnp.floor(out / SCALE)


# ------------------------------------ main ---------------------------------------
if __name__ == "__main__":
    key = jax.random.PRNGKey(0)
    ks = jax.random.split(key, 8)
    xavier_b = (6.0 / (2 * IN_CH)) ** 0.5
    params = {
        'W_Q': jax.random.uniform(ks[0], (NUM_HEADS, IN_CH, HEAD_DIM), jnp.float32, -0.1, 0.1),
        'W_K': jax.random.uniform(ks[1], (NUM_HEADS, IN_CH, HEAD_DIM), jnp.float32, -0.1, 0.1),
        'W_V': jax.random.uniform(ks[2], (NUM_HEADS, IN_CH, HEAD_DIM), jnp.float32, -0.1, 0.1),
        'W_O': jax.random.uniform(ks[3], (NUM_HEADS * HEAD_DIM, IN_CH), jnp.float32,
                                  -xavier_b, xavier_b),
        'W1': jax.random.uniform(ks[4], (HIDDEN, IN_CH), jnp.float32,
                                 -1.0 / IN_CH ** 0.5, 1.0 / IN_CH ** 0.5),
        'b1': jnp.zeros((HIDDEN,), jnp.float32),
        'W2': jax.random.uniform(ks[5], (OUT_CH, HIDDEN), jnp.float32,
                                 -1.0 / HIDDEN ** 0.5, 1.0 / HIDDEN ** 0.5),
        'b2': jnp.zeros((OUT_CH,), jnp.float32),
    }
    x = jax.random.normal(ks[6], (B, IN_CH, H, W), jnp.float32)

    # one-time weight preprocessing, hoisted out of the per-call path
    prep = prepare_params(params)
    prep = jax.tree_util.tree_map(jax.block_until_ready, prep)

    out = transformer_conv_block(x, prep)
    out = jax.block_until_ready(out)

    ref = reference_forward(x, params)
    assert out.shape == (B, OUT_CH, H, W), out.shape
    max_diff = float(jnp.max(jnp.abs(out - ref)))
    # tolerance of 1.0 allows a floor()-boundary flip from float rounding differences
    assert max_diff <= 1.0, f"max diff vs reference: {max_diff}"
    print("KERNEL_OK")
</pallas_src>

<mosaic_0001>
module attributes {stable_mosaic.version = 11 : i64} {
  func.func @_block_kernel(%arg0: i32, %arg1: memref<2x16x128xf32, #tpu.memory_space<vmem>>, %arg2: memref<48x16xbf16, #tpu.memory_space<vmem>>, %arg3: memref<2x16x8xbf16, #tpu.memory_space<vmem>>, %arg4: memref<64x16xbf16, #tpu.memory_space<vmem>>, %arg5: memref<64x1xf32, #tpu.memory_space<vmem>>, %arg6: memref<16x64xbf16, #tpu.memory_space<vmem>>, %arg7: memref<16x1xf32, #tpu.memory_space<vmem>>, %arg8: memref<2x16x128xf32, #tpu.memory_space<vmem>>) attributes {dimension_semantics = [#tpu.dimension_semantics<arbitrary>], iteration_bounds = array<i64: 1>, scalar_prefetch = 0 : i64, scratch_operands = 0 : i64, tpu.core_type = #tpu.core_type<tc>, window_params = [{pipeline_mode = #tpu.pipeline_mode<synchronous>, transform_indices = @transform_0, window_bounds = array<i64: 2, 16, 128>}, {pipeline_mode = #tpu.pipeline_mode<synchronous>, transform_indices = @transform_1, window_bounds = array<i64: 48, 16>}, {pipeline_mode = #tpu.pipeline_mode<synchronous>, transform_indices = @transform_2, window_bounds = array<i64: 2, 16, 8>}, {pipeline_mode = #tpu.pipeline_mode<synchronous>, transform_indices = @transform_3, window_bounds = array<i64: 64, 16>}, {pipeline_mode = #tpu.pipeline_mode<synchronous>, transform_indices = @transform_4, window_bounds = array<i64: 64, 1>}, {pipeline_mode = #tpu.pipeline_mode<synchronous>, transform_indices = @transform_5, window_bounds = array<i64: 16, 64>}, {pipeline_mode = #tpu.pipeline_mode<synchronous>, transform_indices = @transform_6, window_bounds = array<i64: 16, 1>}, {pipeline_mode = #tpu.pipeline_mode<synchronous>, transform_indices = @transform_7, window_bounds = array<i64: 2, 16, 128>}]} {
    %0 = tpu.iota {dimensions = array<i32: 0>} : vector<128x128xi32>
    %1 = tpu.iota {dimensions = array<i32: 1>} : vector<128x128xi32>
    %2 = arith.xori %0, %1 : vector<128x128xi32>
    %c16_i32 = arith.constant 16 : i32
    %3 = vector.broadcast %c16_i32 : i32 to vector<128x128xi32>
    %4 = arith.cmpi slt, %2, %3 : vector<128x128xi32>
    %cst = arith.constant 6.250000e-02 : f32
    %cst_0 = arith.constant 0.000000e+00 : f32
    %5 = vector.broadcast %cst : f32 to vector<128x128xf32>
    %6 = vector.broadcast %cst_0 : f32 to vector<128x128xf32>
    %7 = arith.select %4, %5, %6 : vector<128x128xi1>, vector<128x128xf32>
    %c0 = arith.constant 0 : index
    %c0_1 = arith.constant 0 : index
    %c0_2 = arith.constant 0 : index
    %8 = vector.load %arg1[%c0, %c0_1, %c0_2] : memref<2x16x128xf32, #tpu.memory_space<vmem>>, vector<1x16x128xf32>
    %9 = vector.shape_cast %8 : vector<1x16x128xf32> to vector<16x128xf32>
    %c1 = arith.constant 1 : index
    %c0_3 = arith.constant 0 : index
    %c0_4 = arith.constant 0 : index
    %10 = vector.load %arg1[%c1, %c0_3, %c0_4] : memref<2x16x128xf32, #tpu.memory_space<vmem>>, vector<1x16x128xf32>
    %11 = vector.shape_cast %10 : vector<1x16x128xf32> to vector<16x128xf32>
    %12 = arith.mulf %9, %9 : vector<16x128xf32>
    %13 = arith.mulf %11, %11 : vector<16x128xf32>
    %14 = tpu.concatenate %9, %12, %11, %13 in 0 : vector<16x128xf32>, vector<16x128xf32>, vector<16x128xf32>, vector<16x128xf32> -> vector<64x128xf32>
    %cst_5 = arith.constant dense<0.000000e+00> : vector<64x128xf32>
    %15 = tpu.matmul %14, %7, %cst_5 {dimension_numbers = #tpu.dot_dimension_numbers<[1], [0], [0], [1], [0, 0, 1, 1], [], []>} : vector<64x128xf32>, vector<128x128xf32>, vector<64x128xf32> -> vector<64x128xf32>
    %16 = vector.extract_strided_slice %15 {offsets = [0, 0], sizes = [16, 128], strides = [1, 1]} : vector<64x128xf32> to vector<16x128xf32>
    %17 = vector.extract_strided_slice %15 {offsets = [16, 0], sizes = [16, 128], strides = [1, 1]} : vector<64x128xf32> to vector<16x128xf32>
    %18 = vector.extract_strided_slice %15 {offsets = [32, 0], sizes = [16, 128], strides = [1, 1]} : vector<64x128xf32> to vector<16x128xf32>
    %19 = vector.extract_strided_slice %15 {offsets = [48, 0], sizes = [16, 128], strides = [1, 1]} : vector<64x128xf32> to vector<16x128xf32>
    %20 = arith.subf %9, %16 : vector<16x128xf32>
    %21 = arith.mulf %16, %16 : vector<16x128xf32>
    %22 = arith.subf %17, %21 : vector<16x128xf32>
    %cst_6 = arith.constant 1.000000e-17 : f32
    %23 = vector.broadcast %cst_6 : f32 to vector<16x128xf32>
    %24 = arith.addf %22, %23 : vector<16x128xf32>
    %25 = math.rsqrt %24 : vector<16x128xf32>
    %26 = arith.mulf %20, %25 : vector<16x128xf32>
    %27 = arith.subf %11, %18 : vector<16x128xf32>
    %28 = arith.mulf %18, %18 : vector<16x128xf32>
    %29 = arith.subf %19, %28 : vector<16x128xf32>
    %cst_7 = arith.constant 1.000000e-17 : f32
    %30 = vector.broadcast %cst_7 : f32 to vector<16x128xf32>
    %31 = arith.addf %29, %30 : vector<16x128xf32>
    %32 = math.rsqrt %31 : vector<16x128xf32>
    %33 = arith.mulf %27, %32 : vector<16x128xf32>
    %34 = tpu.concatenate %26, %33 in 1 : vector<16x128xf32>, vector<16x128xf32> -> vector<16x256xf32>
    %c0_8 = arith.constant 0 : index
    %c0_9 = arith.constant 0 : index
    %35 = vector.load %arg2[%c0_8, %c0_9] : memref<48x16xbf16, #tpu.memory_space<vmem>>, vector<48x16xbf16>
    %36 = arith.truncf %34 : vector<16x256xf32> to vector<16x256xbf16>
    %cst_10 = arith.constant dense<0.000000e+00> : vector<48x256xf32>
    %37 = tpu.matmul %35, %36, %cst_10 {dimension_numbers = #tpu.dot_dimension_numbers<[1], [0], [0], [1], [0, 0, 1, 1], [], []>} : vector<48x16xbf16>, vector<16x256xbf16>, vector<48x256xf32> -> vector<48x256xf32>
    %38 = vector.extract_strided_slice %37 {offsets = [0, 0], sizes = [8, 256], strides = [1, 1]} : vector<48x256xf32> to vector<8x256xf32>
    %39 = vector.extract_strided_slice %37 {offsets = [8, 0], sizes = [8, 256], strides = [1, 1]} : vector<48x256xf32> to vector<8x256xf32>
    %40 = vector.extract_strided_slice %37 {offsets = [16, 0], sizes = [8, 256], strides = [1, 1]} : vector<48x256xf32> to vector<8x256xf32>
    %41 = vector.extract_strided_slice %37 {offsets = [24, 0], sizes = [8, 256], strides = [1, 1]} : vector<48x256xf32> to vector<8x256xf32>
    %42 = vector.extract_strided_slice %37 {offsets = [32, 0], sizes = [8, 256], strides = [1, 1]} : vector<48x256xf32> to vector<8x256xf32>
    %43 = vector.extract_strided_slice %37 {offsets = [40, 0], sizes = [8, 256], strides = [1, 1]} : vector<48x256xf32> to vector<8x256xf32>
    %44 = vector.shape_cast %38 : vector<8x256xf32> to vector<8x1x256xf32>
    %45 = vector.shape_cast %40 : vector<8x256xf32> to vector<1x8x256xf32>
    %46 = vector.broadcast %44 : vector<8x1x256xf32> to vector<8x8x256xf32>
    %47 = vector.broadcast %45 : vector<1x8x256xf32> to vector<8x8x256xf32>
    %48 = arith.mulf %46, %47 : vector<8x8x256xf32>
    %49 = vector.shape_cast %39 : vector<8x256xf32> to vector<8x1x256xf32>
    %50 = vector.shape_cast %41 : vector<8x256xf32> to vector<1x8x256xf32>
    %51 = vector.broadcast %49 : vector<8x1x256xf32> to vector<8x8x256xf32>
    %52 = vector.broadcast %50 : vector<1x8x256xf32> to vector<8x8x256xf32>
    %53 = arith.mulf %51, %52 : vector<8x8x256xf32>
    %54 = arith.addf %48, %53 : vector<8x8x256xf32>
    %55 = math.exp %54 : vector<8x8x256xf32>
    %cst_11 = arith.constant dense<0.000000e+00> : vector<8x256xf32>
    %56 = vector.multi_reduction <add>, %55, %cst_11 [1] : vector<8x8x256xf32> to vector<8x256xf32>
    %57 = tpu.reciprocal %56 {approx = true} : vector<8x256xf32> -> vector<8x256xf32>
    %58 = vector.shape_cast %42 : vector<8x256xf32> to vector<1x8x256xf32>
    %59 = vector.broadcast %58 : vector<1x8x256xf32> to vector<8x8x256xf32>
    %60 = arith.mulf %55, %59 : vector<8x8x256xf32>
    %cst_12 = arith.constant dense<0.000000e+00> : vector<8x256xf32>
    %61 = vector.multi_reduction <add>, %60, %cst_12 [1] : vector<8x8x256xf32> to vector<8x256xf32>
    %62 = arith.mulf %61, %57 : vector<8x256xf32>
    %63 = vector.shape_cast %43 : vector<8x256xf32> to vector<1x8x256xf32>
    %64 = vector.broadcast %63 : vector<1x8x256xf32> to vector<8x8x256xf32>
    %65 = arith.mulf %55, %64 : vector<8x8x256xf32>
    %cst_13 = arith.constant dense<0.000000e+00> : vector<8x256xf32>
    %66 = vector.multi_reduction <add>, %65, %cst_13 [1] : vector<8x8x256xf32> to vector<8x256xf32>
    %67 = arith.mulf %66, %57 : vector<8x256xf32>
    %c0_14 = arith.constant 0 : index
    %c0_15 = arith.constant 0 : index
    %c0_16 = arith.constant 0 : index
    %68 = vector.load %arg3[%c0_14, %c0_15, %c0_16] : memref<2x16x8xbf16, #tpu.memory_space<vmem>>, vector<1x16x8xbf16>
    %69 = vector.shape_cast %68 : vector<1x16x8xbf16> to vector<16x8xbf16>
    %70 = arith.truncf %62 : vector<8x256xf32> to vector<8x256xbf16>
    %cst_17 = arith.constant dense<0.000000e+00> : vector<16x256xf32>
    %71 = tpu.matmul %69, %70, %cst_17 {dimension_numbers = #tpu.dot_dimension_numbers<[1], [0], [0], [1], [0, 0, 1, 1], [], []>} : vector<16x8xbf16>, vector<8x256xbf16>, vector<16x256xf32> -> vector<16x256xf32>
    %c1_18 = arith.constant 1 : index
    %c0_19 = arith.constant 0 : index
    %c0_20 = arith.constant 0 : index
    %72 = vector.load %arg3[%c1_18, %c0_19, %c0_20] : memref<2x16x8xbf16, #tpu.memory_space<vmem>>, vector<1x16x8xbf16>
    %73 = vector.shape_cast %72 : vector<1x16x8xbf16> to vector<16x8xbf16>
    %74 = arith.truncf %67 : vector<8x256xf32> to vector<8x256xbf16>
    %cst_21 = arith.constant dense<0.000000e+00> : vector<16x256xf32>
    %75 = tpu.matmul %73, %74, %cst_21 {dimension_numbers = #tpu.dot_dimension_numbers<[1], [0], [0], [1], [0, 0, 1, 1], [], []>} : vector<16x8xbf16>, vector<8x256xbf16>, vector<16x256xf32> -> vector<16x256xf32>
    %76 = arith.addf %71, %75 : vector<16x256xf32>
    %77 = arith.addf %34, %76 : vector<16x256xf32>
    %cst_22 = arith.constant 0.000000e+00 : f32
    %78 = vector.broadcast %cst_22 : f32 to vector<16x256xf32>
    %79 = arith.maximumf %77, %78 : vector<16x256xf32>
    %c0_23 = arith.constant 0 : index
    %c0_24 = arith.constant 0 : index
    %80 = vector.load %arg4[%c0_23, %c0_24] : memref<64x16xbf16, #tpu.memory_space<vmem>>, vector<64x16xbf16>
    %81 = arith.truncf %79 : vector<16x256xf32> to vector<16x256xbf16>
    %cst_25 = arith.constant dense<0.000000e+00> : vector<64x256xf32>
    %82 = tpu.matmul %80, %81, %cst_25 {dimension_numbers = #tpu.dot_dimension_numbers<[1], [0], [0], [1], [0, 0, 1, 1], [], []>} : vector<64x16xbf16>, vector<16x256xbf16>, vector<64x256xf32> -> vector<64x256xf32>
    %c0_26 = arith.constant 0 : index
    %c0_27 = arith.constant 0 : index
    %83 = vector.load %arg5[%c0_26, %c0_27] : memref<64x1xf32, #tpu.memory_space<vmem>>, vector<64x1xf32>
    %84 = vector.broadcast %83 : vector<64x1xf32> to vector<64x256xf32>
    %85 = arith.addf %82, %84 : vector<64x256xf32>
    %cst_28 = arith.constant 0.000000e+00 : f32
    %86 = vector.broadcast %cst_28 : f32 to vector<64x256xf32>
    %87 = arith.maximumf %85, %86 : vector<64x256xf32>
    %c0_29 = arith.constant 0 : index
    %c0_30 = arith.constant 0 : index
    %88 = vector.load %arg6[%c0_29, %c0_30] : memref<16x64xbf16, #tpu.memory_space<vmem>>, vector<16x64xbf16>
    %89 = arith.truncf %87 : vector<64x256xf32> to vector<64x256xbf16>
    %cst_31 = arith.constant dense<0.000000e+00> : vector<16x256xf32>
    %90 = tpu.matmul %88, %89, %cst_31 {dimension_numbers = #tpu.dot_dimension_numbers<[1], [0], [0], [1], [0, 0, 1, 1], [], []>} : vector<16x64xbf16>, vector<64x256xbf16>, vector<16x256xf32> -> vector<16x256xf32>
    %c0_32 = arith.constant 0 : index
    %c0_33 = arith.constant 0 : index
    %91 = vector.load %arg7[%c0_32, %c0_33] : memref<16x1xf32, #tpu.memory_space<vmem>>, vector<16x1xf32>
    %92 = vector.broadcast %91 : vector<16x1xf32> to vector<16x256xf32>
    %93 = arith.addf %90, %92 : vector<16x256xf32>
    %94 = vector.extract_strided_slice %93 {offsets = [0, 0], sizes = [16, 128], strides = [1, 1]} : vector<16x256xf32> to vector<16x128xf32>
    %95 = vector.extract_strided_slice %93 {offsets = [0, 128], sizes = [16, 128], strides = [1, 1]} : vector<16x256xf32> to vector<16x128xf32>
    %96 = arith.mulf %94, %94 : vector<16x128xf32>
    %97 = arith.mulf %95, %95 : vector<16x128xf32>
    %98 = tpu.concatenate %94, %96, %95, %97 in 0 : vector<16x128xf32>, vector<16x128xf32>, vector<16x128xf32>, vector<16x128xf32> -> vector<64x128xf32>
    %cst_34 = arith.constant dense<0.000000e+00> : vector<64x128xf32>
    %99 = tpu.matmul %98, %7, %cst_34 {dimension_numbers = #tpu.dot_dimension_numbers<[1], [0], [0], [1], [0, 0, 1, 1], [], []>} : vector<64x128xf32>, vector<128x128xf32>, vector<64x128xf32> -> vector<64x128xf32>
    %100 = vector.extract_strided_slice %99 {offsets = [0, 0], sizes = [16, 128], strides = [1, 1]} : vector<64x128xf32> to vector<16x128xf32>
    %101 = vector.extract_strided_slice %99 {offsets = [16, 0], sizes = [16, 128], strides = [1, 1]} : vector<64x128xf32> to vector<16x128xf32>
    %102 = vector.extract_strided_slice %99 {offsets = [32, 0], sizes = [16, 128], strides = [1, 1]} : vector<64x128xf32> to vector<16x128xf32>
    %103 = vector.extract_strided_slice %99 {offsets = [48, 0], sizes = [16, 128], strides = [1, 1]} : vector<64x128xf32> to vector<16x128xf32>
    %104 = arith.subf %94, %100 : vector<16x128xf32>
    %105 = arith.mulf %100, %100 : vector<16x128xf32>
    %106 = arith.subf %101, %105 : vector<16x128xf32>
    %cst_35 = arith.constant 9.99999974E-6 : f32
    %107 = vector.broadcast %cst_35 : f32 to vector<16x128xf32>
    %108 = arith.addf %106, %107 : vector<16x128xf32>
    %109 = math.rsqrt %108 : vector<16x128xf32>
    %110 = arith.mulf %104, %109 : vector<16x128xf32>
    %111 = arith.subf %95, %102 : vector<16x128xf32>
    %112 = arith.mulf %102, %102 : vector<16x128xf32>
    %113 = arith.subf %103, %112 : vector<16x128xf32>
    %cst_36 = arith.constant 9.99999974E-6 : f32
    %114 = vector.broadcast %cst_36 : f32 to vector<16x128xf32>
    %115 = arith.addf %113, %114 : vector<16x128xf32>
    %116 = math.rsqrt %115 : vector<16x128xf32>
    %117 = arith.mulf %111, %116 : vector<16x128xf32>
    %cst_37 = arith.constant 1.000000e+06 : f32
    %118 = vector.broadcast %cst_37 : f32 to vector<16x128xf32>
    %119 = arith.mulf %9, %118 : vector<16x128xf32>
    %120 = arith.addf %110, %119 : vector<16x128xf32>
    %cst_38 = arith.constant 0.000000e+00 : f32
    %121 = vector.broadcast %cst_38 : f32 to vector<16x128xf32>
    %122 = arith.maximumf %120, %121 : vector<16x128xf32>
    %cst_39 = arith.constant 9.99999997E-7 : f32
    %123 = vector.broadcast %cst_39 : f32 to vector<16x128xf32>
    %124 = arith.mulf %122, %123 : vector<16x128xf32>
    %125 = math.floor %124 : vector<16x128xf32>
    %c0_40 = arith.constant 0 : index
    %c0_41 = arith.constant 0 : index
    %c0_42 = arith.constant 0 : index
    %126 = vector.load %arg8[%c0_40, %c0_41, %c0_42] : memref<2x16x128xf32, #tpu.memory_space<vmem>>, vector<1x16x128xf32>
    %127 = vector.shape_cast %126 : vector<1x16x128xf32> to vector<16x128xf32>
    %128 = vector.shape_cast %125 : vector<16x128xf32> to vector<1x16x128xf32>
    tpu.vector_store %arg8[%c0_40, %c0_41, %c0_42], %128 {strides = array<i32>} : memref<2x16x128xf32, #tpu.memory_space<vmem>>, vector<1x16x128xf32>,
    %cst_43 = arith.constant 1.000000e+06 : f32
    %129 = vector.broadcast %cst_43 : f32 to vector<16x128xf32>
    %130 = arith.mulf %11, %129 : vector<16x128xf32>
    %131 = arith.addf %117, %130 : vector<16x128xf32>
    %cst_44 = arith.constant 0.000000e+00 : f32
    %132 = vector.broadcast %cst_44 : f32 to vector<16x128xf32>
    %133 = arith.maximumf %131, %132 : vector<16x128xf32>
    %cst_45 = arith.constant 9.99999997E-7 : f32
    %134 = vector.broadcast %cst_45 : f32 to vector<16x128xf32>
    %135 = arith.mulf %133, %134 : vector<16x128xf32>
    %136 = math.floor %135 : vector<16x128xf32>
    %c1_46 = arith.constant 1 : index
    %c0_47 = arith.constant 0 : index
    %c0_48 = arith.constant 0 : index
    %137 = vector.load %arg8[%c1_46, %c0_47, %c0_48] : memref<2x16x128xf32, #tpu.memory_space<vmem>>, vector<1x16x128xf32>
    %138 = vector.shape_cast %137 : vector<1x16x128xf32> to vector<16x128xf32>
    %139 = vector.shape_cast %136 : vector<16x128xf32> to vector<1x16x128xf32>
    tpu.vector_store %arg8[%c1_46, %c0_47, %c0_48], %139 {strides = array<i32>} : memref<2x16x128xf32, #tpu.memory_space<vmem>>, vector<1x16x128xf32>,
    return
  }
  func.func @transform_0(%arg0: i32) -> (i32, i32, i32) {
    %c0_i32 = arith.constant 0 : i32
    %c0_i32_0 = arith.constant 0 : i32
    %c0_i32_1 = arith.constant 0 : i32
    %c0_i32_2 = arith.constant 0 : i32
    return %c0_i32, %c0_i32_0, %c0_i32_1 : i32, i32, i32
  }
  func.func @transform_1(%arg0: i32) -> (i32, i32) {
    %c0_i32 = arith.constant 0 : i32
    %c0_i32_0 = arith.constant 0 : i32
    %c0_i32_1 = arith.constant 0 : i32
    return %c0_i32, %c0_i32_0 : i32, i32
  }
  func.func @transform_2(%arg0: i32) -> (i32, i32, i32) {
    %c0_i32 = arith.constant 0 : i32
    %c0_i32_0 = arith.constant 0 : i32
    %c0_i32_1 = arith.constant 0 : i32
    %c0_i32_2 = arith.constant 0 : i32
    return %c0_i32, %c0_i32_0, %c0_i32_1 : i32, i32, i32
  }
  func.func @transform_3(%arg0: i32) -> (i32, i32) {
    %c0_i32 = arith.constant 0 : i32
    %c0_i32_0 = arith.constant 0 : i32
    %c0_i32_1 = arith.constant 0 : i32
    return %c0_i32, %c0_i32_0 : i32, i32
  }
  func.func @transform_4(%arg0: i32) -> (i32, i32) {
    %c0_i32 = arith.constant 0 : i32
    %c0_i32_0 = arith.constant 0 : i32
    %c0_i32_1 = arith.constant 0 : i32
    return %c0_i32, %c0_i32_0 : i32, i32
  }
  func.func @transform_5(%arg0: i32) -> (i32, i32) {
    %c0_i32 = arith.constant 0 : i32
    %c0_i32_0 = arith.constant 0 : i32
    %c0_i32_1 = arith.constant 0 : i32
    return %c0_i32, %c0_i32_0 : i32, i32
  }
  func.func @transform_6(%arg0: i32) -> (i32, i32) {
    %c0_i32 = arith.constant 0 : i32
    %c0_i32_0 = arith.constant 0 : i32
    %c0_i32_1 = arith.constant 0 : i32
    return %c0_i32, %c0_i32_0 : i32, i32
  }
  func.func @transform_7(%arg0: i32) -> (i32, i32, i32) {
    %c0_i32 = arith.constant 0 : i32
    %c0_i32_0 = arith.constant 0 : i32
    %c0_i32_1 = arith.constant 0 : i32
    %c0_i32_2 = arith.constant 0 : i32
    return %c0_i32, %c0_i32_0, %c0_i32_1 : i32, i32, i32
  }
}

</mosaic_0001>

<bundles_post_ra>
// kernel: transformer_conv_block.1
= control target key start
LH: loop header
LB: loop body
LE: loop exit
PB: predicated region body
PF: predicated region fallthrough
CT: control target
= control target key end

     0   :  { %v27_v0 = vlaneseq  ;;  %v3056_v12 = vmov 0  ;;  %v3059_v13 = vmov 0  ;;  %v2995_v16 = vmov 0.0625   ;;  %s2985_s0 = inlined_call_operand.vmem [shape: f32[2,16,128], index: 0, kind: input, shape index: {}]   ;;  %s2986_s1 = inlined_call_operand.vmem [shape: bf16[48,16], index: 1, kind: input, shape index: {}]   ;;  %s2987_s2 = inlined_call_operand.vmem [shape: bf16[2,16,8], index: 2, kind: input, shape index: {}]   ;;  %s2988_s3 = inlined_call_operand.vmem [shape: bf16[64,16], index: 3, kind: input, shape index: {}]   ;;  %s2989_s4 = inlined_call_operand.vmem [shape: f32[64,1], index: 4, kind: input, shape index: {}]   ;;  %s2990_s6 = inlined_call_operand.vmem [shape: f32[16,1], index: 6, kind: input, shape index: {}]   ;;  %s2991_s5 = inlined_call_operand.vmem [shape: bf16[16,64], index: 5, kind: input, shape index: {}]   ;;  %s2992_s7 = inlined_call_operand.vmem [shape: f32[2,16,128], index: 7, kind: output, shape index: {}]  }
   0x1   :  { %v2062_v1 = vld [vmem:[%s2985_s0] sm:$0xff]  ;;  %v3062_v17 = vmov 0  ;;  %v3065_v20 = vmov 0  ;;  %v3068_v23 = vmov 0  ;;  %v3071_v26 = vmov 0  ;;  %v95_v52 = vld [vmem:[%s2985_s0 + $0x8] sm:$0xff] }
   0x2   :  { %v2064_v2 = vshrl.u32 %v27_v0, 7  ;;  %v2066_v3 = vand.u32 127, %v27_v0  ;;  %1859 = vmatprep.mubr.f32.mxu0 %v2062_v1  ;;  %v3074_v29 = vmov 0  ;;  %v3077_v32 = vmov 0  ;;  %v1719_v55 = vld [vmem:[%s2985_s0 + $0x10] sm:$0xff]  ;;  %v1720_v56 = vld [vmem:[%s2985_s0 + $0x18] sm:$0xff] }
   0x3   :  { %v3080_v35 = vmov 0  ;;  %v3083_v38 = vmov 0  ;;  %v3086_v41 = vmov 0  ;;  %v3089_v44 = vmov 0 }
   0x4   :  { %v43_v4 = vadd.s32 120, %v2064_v2  ;;  %v42_v5 = vadd.s32 112, %v2064_v2  ;;  %v41_v6 = vadd.s32 104, %v2064_v2  ;;  %v40_v7 = vadd.s32 96, %v2064_v2 }
   0x5   :  { %v39_v11 = vadd.s32 88, %v2064_v2  ;;  %v38_v15 = vadd.s32 80, %v2064_v2  ;;  %v37_v19 = vadd.s32 72, %v2064_v2  ;;  %v36_v22 = vadd.s32 64, %v2064_v2 }
   0x6   :  { %v61_v8 = vxor.u32 %v2066_v3, %v43_v4  ;;  %v60_v9 = vxor.u32 %v2066_v3, %v42_v5  ;;  %v59_v10 = vxor.u32 %v2066_v3, %v41_v6  ;;  %v58_v14 = vxor.u32 %v2066_v3, %v40_v7 }
   0x7   :  { %v57_v18 = vxor.u32 %v2066_v3, %v39_v11  ;;  %v56_v21 = vxor.u32 %v2066_v3, %v38_v15  ;;  %v55_v24 = vxor.u32 %v2066_v3, %v37_v19  ;;  %v35_v25 = vadd.s32 56, %v2064_v2 }
   0x8   :  { %vm2077_vm0 = vcmp.lt.s32.totalorder %v61_v8, 16  ;;  %vm2081_vm1 = vcmp.lt.s32.totalorder %v60_v9, 16  ;;  %vm2093_vm2 = vcmp.lt.s32.totalorder %v59_v10, 16  ;;  %vm2105_vm3 = vcmp.lt.s32.totalorder %v58_v14, 16 }
   0x9   :  { %v3057_v12 = vsel %vm2077_vm0, 4294967295, %v3056_v12  ;;  %v3060_v13 = vsel %vm2081_vm1, 4294967295, %v3059_v13  ;;  %1827 = vmatprep.subr.msk.mxu0 %vm2077_vm0, %v2995_v16  ;;  %v3063_v17 = vsel %vm2093_vm2, 4294967295, %v3062_v17  ;;  %v3066_v20 = vsel %vm2105_vm3, 4294967295, %v3065_v20 }
   0xa   :  { %3058 = vst [vmem:[#allocation2_spill] sm:$0xff] %v3057_v12  ;;  %3061 = vst [vmem:[#allocation3_spill] sm:$0xff] %v3060_v13  ;;  %1828 = vmatpush3.msk.msra.mxu0 %vm2077_vm0, %v2995_v16  ;;  %vm2117_vm4 = vcmp.lt.s32.totalorder %v57_v18, 16  ;;  %vm2129_vm5 = vcmp.lt.s32.totalorder %v56_v21, 16  ;;  %v54_v27 = vxor.u32 %v2066_v3, %v36_v22  ;;  %v34_v28 = vadd.s32 48, %v2064_v2 }
   0xb   :  { %3064 = vst [vmem:[#allocation4_spill] sm:$0xff] %v3063_v17  ;;  %1829 = vmatprep.subr.msk.mxu0 %vm2081_vm1, %v2995_v16  ;;  %3067 = vst [vmem:[#allocation5_spill] sm:$0xff] %v3066_v20  ;;  %v3069_v23 = vsel %vm2117_vm4, 4294967295, %v3068_v23  ;;  %v3072_v26 = vsel %vm2129_vm5, 4294967295, %v3071_v26  ;;  %vm2141_vm6 = vcmp.lt.s32.totalorder %v55_v24, 16  ;;  %v53_v30 = vxor.u32 %v2066_v3, %v35_v25 }
   0xc   :  { %1830 = vmatpush3.msk.msra.mxu0 %vm2081_vm1, %v2995_v16  ;;  %3070 = vst [vmem:[#allocation6_spill] sm:$0xff] %v3069_v23  ;;  %3073 = vst [vmem:[#allocation7_spill] sm:$0xff] %v3072_v26  ;;  %v3075_v29 = vsel %vm2141_vm6, 4294967295, %v3074_v29  ;;  %v33_v31 = vadd.s32 40, %v2064_v2  ;;  %vm2153_vm7 = vcmp.lt.s32.totalorder %v54_v27, 16  ;;  %v52_v33 = vxor.u32 %v2066_v3, %v34_v28 }
   0xd   :  { %1831 = vmatprep.subr.msk.mxu0 %vm2093_vm2, %v2995_v16  ;;  %3076 = vst [vmem:[#allocation8_spill] sm:$0xff] %v3075_v29  ;;  %v3078_v32 = vsel %vm2153_vm7, 4294967295, %v3077_v32  ;;  %v32_v34 = vadd.s32 32, %v2064_v2  ;;  %vm2165_vm8 = vcmp.lt.s32.totalorder %v53_v30, 16  ;;  %v31_v37 = vadd.s32 24, %v2064_v2 }
   0xe   :  { %1832 = vmatpush3.msk.msra.mxu0 %vm2093_vm2, %v2995_v16  ;;  %3079 = vst [vmem:[#allocation9_spill] sm:$0xff] %v3078_v32  ;;  %v3081_v35 = vsel %vm2165_vm8, 4294967295, %v3080_v35  ;;  %v51_v36 = vxor.u32 %v2066_v3, %v33_v31  ;;  %vm2177_vm9 = vcmp.lt.s32.totalorder %v52_v33, 16  ;;  %v30_v40 = vadd.s32 16, %v2064_v2 }
   0xf   :  { %1833 = vmatprep.subr.msk.mxu0 %vm2105_vm3, %v2995_v16  ;;  %3082 = vst [vmem:[#allocation10_spill] sm:$0xff] %v3081_v35  ;;  %v3084_v38 = vsel %vm2177_vm9, 4294967295, %v3083_v38  ;;  %v50_v39 = vxor.u32 %v2066_v3, %v32_v34  ;;  %v49_v42 = vxor.u32 %v2066_v3, %v31_v37  ;;  %v29_v43 = vadd.s32 8, %v2064_v2 }
  0x10   :  { %1834 = vmatpush3.msk.msra.mxu0 %vm2105_vm3, %v2995_v16  ;;  %3085 = vst [vmem:[#allocation11_spill] sm:$0xff] %v3084_v38  ;;  %vm2189_vm10 = vcmp.lt.s32.totalorder %v51_v36, 16  ;;  %v48_v45 = vxor.u32 %v2066_v3, %v30_v40  ;;  %v3092_v46 = vmov 0  ;;  %v3095_v48 = vmov 0 }
  0x11   :  { %1835 = vmatprep.subr.msk.mxu0 %vm2117_vm4, %v2995_v16  ;;  %v3087_v41 = vsel %vm2189_vm10, 4294967295, %v3086_v41  ;;  %vm2201_vm11 = vcmp.lt.s32.totalorder %v50_v39, 16  ;;  %vm2212_vm12 = vcmp.lt.s32.totalorder %v49_v42, 16  ;;  %v47_v47 = vxor.u32 %v2066_v3, %v29_v43 }
  0x12   :  { %1836 = vmatpush3.msk.msra.mxu0 %vm2117_vm4, %v2995_v16  ;;  %3088 = vst [vmem:[#allocation12_spill] sm:$0xff] %v3087_v41  ;;  %v3090_v44 = vsel %vm2201_vm11, 4294967295, %v3089_v44  ;;  %v3093_v46 = vsel %vm2212_vm12, 4294967295, %v3092_v46  ;;  %vm2223_vm13 = vcmp.lt.s32.totalorder %v48_v45, 16  ;;  %v46_v49 = vxor.u32 %v2066_v3, %v2064_v2  ;;  %v1924_v45 = vld [vmem:[%s2986_s1 + $0x10] sm:$0xff]  }
  0x13   :  { %1837 = vmatprep.subr.msk.mxu0 %vm2129_vm5, %v2995_v16  ;;  %3091 = vst [vmem:[#allocation13_spill] sm:$0xff] %v3090_v44  ;;  %3094 = vst [vmem:[#allocation14_spill] sm:$0xff] %v3093_v46  ;;  %v3096_v48 = vsel %vm2223_vm13, 4294967295, %v3095_v48  ;;  %vm2235_vm14 = vcmp.lt.s32.totalorder %v47_v47, 16  ;;  %v3098_v50 = vmov 0  ;;  %v3101_v51 = vmov 0 }
  0x14   :  { %1838 = vmatpush3.msk.msra.mxu0 %vm2129_vm5, %v2995_v16  ;;  %3097 = vst [vmem:[#allocation15_spill] sm:$0xff] %v3096_v48  ;;  %v3099_v50 = vsel %vm2235_vm14, 4294967295, %v3098_v50  ;;  %vm2245_vm15 = vcmp.lt.s32.totalorder %v46_v49, 16  ;;  %v99_v53 = vmul.f32 %v2062_v1, %v2062_v1  ;;  %v100_v54 = vmul.f32 %v95_v52, %v95_v52  ;;  %v1923_v47 = vld [vmem:[%s2986_s1 + $0x8] sm:$0xff]  }
  0x15   :  { %1839 = vmatprep.subr.msk.mxu0 %vm2141_vm6, %v2995_v16  ;;  %3100 = vst [vmem:[#allocation16_spill] sm:$0xff] %v3099_v50  ;;  %v3102_v51 = vsel %vm2245_vm15, 4294967295, %v3101_v51  ;;  %v101_v57 = vmul.f32 %v1719_v55, %v1719_v55  ;;  %v102_v58 = vmul.f32 %v1720_v56, %v1720_v56  ;;  %v2997_v59 = vmov 0  }
  0x16   :  { %1840 = vmatpush3.msk.msra.mxu0 %vm2141_vm6, %v2995_v16  ;;  %3103 = vst [vmem:[#allocation17_spill] sm:$0xff] %v3102_v51  ;;  %317 = vmatprep.mubr.bf16.mxu1 %v2997_v59  ;;  %v2018_v49 = vmov 1966171168  }
  0x17   :  { %1841 = vmatprep.subr.msk.mxu0 %vm2153_vm7, %v2995_v16  ;;  %1921 = vset.pattern.permute.xlu1 %v2997_v59 }
  0x18   :  { %1842 = vmatpush3.msk.msra.mxu0 %vm2153_vm7, %v2995_v16  ;;  %1920 = vset.pattern.permute.xlu0 %v2997_v59 }
  0x19   :  { %1843 = vmatprep.subr.msk.mxu0 %vm2165_vm8, %v2995_v16 }
  0x1a   :  { %1844 = vmatpush3.msk.msra.mxu0 %vm2165_vm8, %v2995_v16 }
  0x1b   :  { %1845 = vmatprep.subr.msk.mxu0 %vm2177_vm9, %v2995_v16 }
  0x1c   :  { %1846 = vmatpush3.msk.msra.mxu0 %vm2177_vm9, %v2995_v16 }
  0x1d   :  { %1847 = vmatprep.subr.msk.mxu0 %vm2189_vm10, %v2995_v16 }
  0x1e   :  { %1848 = vmatpush3.msk.msra.mxu0 %vm2189_vm10, %v2995_v16  ;;  %vm3168_vm10 = vcmask 1047559  }
  0x1f   :  { %1849 = vmatprep.subr.msk.mxu0 %vm2201_vm11, %v2995_v16 }
  0x20   :  { %1850 = vmatpush3.msk.msra.mxu0 %vm2201_vm11, %v2995_v16  ;;  %vm3137_vm11 = vcmask 1044484  }
  0x21   :  { %1851 = vmatprep.subr.msk.mxu0 %vm2212_vm12, %v2995_v16 }
  0x22   :  { %1852 = vmatpush3.msk.msra.mxu0 %vm2212_vm12, %v2995_v16  ;;  %vm3126_vm12 = vcmask 1046534  }
  0x23   :  { %1853 = vmatprep.subr.msk.mxu0 %vm2223_vm13, %v2995_v16 }
  0x24   :  { %1854 = vmatpush3.msk.msra.mxu0 %vm2223_vm13, %v2995_v16  ;;  %vm3121_vm13 = vcmask 1041409  }
  0x25   :  { %1855 = vmatprep.subr.msk.mxu0 %vm2235_vm14, %v2995_v16 }
  0x26   :  { %1856 = vmatpush3.msk.msra.mxu0 %vm2235_vm14, %v2995_v16  ;;  %vm3122_vm14 = vcmask 1042434  }
  0x27   :  { %1857 = vmatprep.subr.msk.mxu0 %vm2245_vm15, %v2995_v16 }
  0x28   :  { %1858 = vmatpush3.msk.msra.mxu0 %vm2245_vm15, %v2995_v16  ;;  %vm3044_vm15 = vcmask 130048  }
  0x29   :  { %1860 = vmatmul.mubr.f32.vlgmr.msra.gmra.mxu0 %v95_v52 }
  0x2a   :  { %1862 = vmatprep.mubr.f32.mxu0 %v99_v53 }
  0x2d   :  { %1863 = vmatmul.mubr.f32.gmra.mxu0 %v100_v54 }
  0x2e   :  { %1865 = vmatprep.mubr.f32.mxu0 %v1719_v55 }
  0x31   :  { %1866 = vmatmul.mubr.f32.gmra.mxu0 %v1720_v56 }
  0x32   :  { %1868 = vmatprep.mubr.f32.mxu0 %v101_v57 }
  0x35   :  { %1869 = vmatmul.mubr.f32.gmra.mxu0 %v102_v58 }
  0x36   :  { %297 = vmatprep.mubr.bf16.mxu0 %v2997_v59 }
  0xe9   :  { %v1861_v60 = vpop.f32.mrf.mxu0 }
  0xea   :  { %v211_v3 = vmul.f32 %v1861_v60, %v1861_v60  ;;  %v209_v34 = vsub.f32 %v95_v52, %v1861_v60  ;;  %v333_v52 = vunpack.c.l.s4 %v2018_v49 }
  0xeb   :  { %v169_v61 = vpop.f32.mrf.mxu0 }
  0xec   :  { %v210_v63 = vmul.f32 %v169_v61, %v169_v61  ;;  %v208_v27 = vsub.f32 %v2062_v1, %v169_v61  ;;  %v1922_v1 = vld [vmem:[%s2986_s1] sm:$0xff]   ;;  %v334_v53 = vunpack.c.0.s8 %v333_v52 }
  0xed   :  { %v1864_v62 = vpop.f32.mrf.mxu0 }
  0xee   :  { %v213_v6 = vsub.f32 %v1864_v62, %v211_v3 }
  0xef   :  { %v179_v0 = vpop.f32.mrf.mxu0 }
  0xf0   :  { %v212_v4 = vsub.f32 %v179_v0, %v210_v63  ;;  %v215_v15 = vadd.f32 1e-17, %v213_v6  ;;  %v2306_v63 = vsub.s32 0, %v2064_v2  ;;  %v2309_v0 = vsub.s32 1, %v2064_v2 }
  0xf1   :  { %v1867_v5 = vpop.f32.mrf.mxu0 }
  0xf2   :  { %v223_v8 = vmul.f32 %v1867_v5, %v1867_v5  ;;  %v214_v9 = vadd.f32 1e-17, %v212_v4  ;;  %v221_v30 = vsub.f32 %v1720_v56, %v1867_v5 }
  0xf3   :  { %v189_v7 = vpop.f32.mrf.mxu0 }
  0xf4   :  { %v222_v11 = vmul.f32 %v189_v7, %v189_v7  ;;  %1932 = vrsqrt.f32 %v214_v9  ;;  %v220_v31 = vsub.f32 %v1719_v55, %v189_v7  ;;  %v337_v55 = vsub.s32 %v334_v53, %v2064_v2 }
  0xf5   :  { %v1870_v10 = vpop.f32.mrf.mxu0 }
  0xf6   :  { %v225_v14 = vsub.f32 %v1870_v10, %v223_v8 }
  0xf7   :  { %v199_v18 = vpop.f32.mrf.mxu0 }
  0xf8   :  { %v227_v19 = vadd.f32 1e-17, %v225_v14  ;;  %v224_v21 = vsub.f32 %v199_v18, %v222_v11 }
  0xfa   :  { %1934 = vrsqrt.f32 %v227_v19  ;;  %v226_v22 = vadd.f32 1e-17, %v224_v21 }
  0xfb   :  { %1936 = vrsqrt.f32 %v215_v15 }
  0xfc   :  { %1938 = vrsqrt.f32 %v226_v22 }
 0x101   :  { %v1933_v24 = vpop.eup %1932 }
 0x102   :  { %v2277_v36 = vmul.f32 %v1933_v24, %v208_v27 }
 0x104   :  { %3104 = vst [vmem:[#allocation18_spill] sm:$0xff] %v2277_v36 }
 0x107   :  { %v1935_v25 = vpop.eup %1934 }
 0x108   :  { %v1937_v28 = vpop.eup %1936  ;;  %v2281_v39 = vmul.f32 %v1935_v25, %v221_v30 }
 0x109   :  { %v1939_v33 = vpop.eup %1938  ;;  %v2283_v40 = vmul.f32 %v1937_v28, %v209_v34 }
 0x10a   :  { %v2279_v37 = vmul.f32 %v1939_v33, %v220_v31  ;;  %3106 = vst [vmem:[#allocation20_spill] sm:$0xff] %v2281_v39 }
 0x10b   :  { %3107 = vst [vmem:[#allocation21_spill] sm:$0xff] %v2283_v40  ;;  %v238_v43 = vpack.c.bf16 %v2283_v40, %v2277_v36 }
 0x10c   :  { %3105 = vst [vmem:[#allocation19_spill] sm:$0xff] %v2279_v37  ;;  %v239_v42 = vpack.c.bf16 %v2281_v39, %v2279_v37 }
 0x10e   :  { %279 = vmatprep.subr.bf16.mxu0 %v239_v42  ;;  %1915 = vmatprep.subr.bf16.mxu1 %v239_v42 }
 0x10f   :  { %280 = vmatpush1.bf16.msra.mxu0 %v238_v43  ;;  %1916 = vmatpush1.bf16.msra.mxu1 %v238_v43 }
 0x112   :  { %1740 = vmatmul.mubr.msk.bf16.vlgmr.msra.gmra.mxu0 %vm3044_vm15, %v1922_v1  ;;  %1742 = vmatmul.mubr.msk.bf16.vlgmr.msra.gmra.mxu1 %vm3044_vm15, %v1924_v45 }
 0x113   :  { %307 = vmatprep.mubr.bf16.mxu0 %v2997_v59  ;;  %1180 = vmatprep.mubr.bf16.mxu1 %v2997_v59 }
 0x11a   :  { %1741 = vmatmul.mubr.msk.bf16.gmra.mxu0 %vm3044_vm15, %v1923_v47  ;;  %vm3125_vm15 = vcmask 1045509  }
 0x11b   :  { %1546 = vmatprep.mubr.bf16.mxu0 %v2997_v59 }
 0x1d2   :  { %v299_v54 = vpop.f32.mrf.mxu0 }
 0x1d4   :  { %v301_v56 = vpop.f32.mrf.mxu0 }
 0x1d5   :  { %v330_v57 = vcombine.low %v299_v54, %v301_v56  ;;  %v331_v58 = vcombine.high %v299_v54, %v301_v56 }
 0x1d6   :  { %v303_v60 = vpop.f32.mrf.mxu0 }
 0x1d7   :  { %v338_v61 = vrot.slane %v330_v57, %v337_v55  ;;  %v345_v62 = vrot.slane %v331_v58, %v337_v55 }
 0x1d8   :  { %v305_v3 = vpop.f32.mrf.mxu0 }
 0x1d9   :  { %v346_v4 = vcombine.high %v338_v61, %v338_v61  ;;  %v347_v5 = vcombine.high %v345_v62, %v345_v62  ;;  %v2311_v6 = vrot.slane %v338_v61, %v337_v55  ;;  %v2313_v7 = vrot.slane %v345_v62, %v337_v55 }
 0x1da   :  { %v478_v8 = vcombine.low %v303_v60, %v305_v3  ;;  %v479_v19 = vcombine.high %v303_v60, %v305_v3  ;;  %v309_v52 = vpop.f32.mrf.mxu0 }
 0x1db   :  { %v2315_v9 = vrot.slane %v346_v4, %v337_v55  ;;  %v2317_v10 = vrot.slane %v347_v5, %v337_v55  ;;  %v2321_v11 = vcombine.high %v2311_v6, %v2311_v6  ;;  %v2325_v2 = vcombine.high %v2313_v7, %v2313_v7 }
 0x1dc   :  { %v383_v14 = vrot.slane %v2311_v6, %v2306_v63  ;;  %v387_v15 = vrot.slane %v2311_v6, %v2309_v0  ;;  %v415_v18 = vrot.slane %v2313_v7, %v2306_v63  ;;  %v419_v25 = vrot.slane %v2313_v7, %v2309_v0 }
 0x1dd   :  { %v378_v21 = vcombine.high %v2315_v9, %v2315_v9  ;;  %v2337_v22 = vcombine.high %v2317_v10, %v2317_v10  ;;  %v391_v24 = vrot.slane %v2315_v9, %v2306_v63  ;;  %v395_v27 = vrot.slane %v2315_v9, %v2309_v0 }
 0x1de   :  { %v399_v28 = vrot.slane %v2321_v11, %v2306_v63  ;;  %v403_v30 = vrot.slane %v2321_v11, %v2309_v0  ;;  %v423_v31 = vrot.slane %v2317_v10, %v2306_v63  ;;  %v427_v42 = vrot.slane %v2317_v10, %v2309_v0 }
 0x1df   :  { %v407_v33 = vrot.slane %v378_v21, %v2306_v63  ;;  %v411_v34 = vrot.slane %v378_v21, %v2309_v0  ;;  %v431_v43 = vrot.slane %v2325_v2, %v2306_v63  ;;  %v435_v1 = vrot.slane %v2325_v2, %v2309_v0  ;;  %v2375_v21 = vpop.f32.mrf.mxu0 }
 0x1e0   :  { %v439_v45 = vrot.slane %v2337_v22, %v2306_v63  ;;  %v486_v47 = vrot.slane %v478_v8, %v337_v55  ;;  %v493_v49 = vrot.slane %v479_v19, %v337_v55  ;;  %v460_v54 = vmul.f32 %v383_v14, %v309_v52 }
 0x1e1   :  { %v462_v56 = vmul.f32 %v391_v24, %v309_v52  ;;  %v464_v57 = vmul.f32 %v399_v28, %v309_v52  ;;  %v466_v3 = vmul.f32 %v407_v33, %v309_v52  ;;  %v468_v4 = vmul.f32 %v415_v18, %v309_v52 }
 0x1e2   :  { %v494_v58 = vcombine.high %v486_v47, %v486_v47  ;;  %v495_v60 = vcombine.high %v493_v49, %v493_v49  ;;  %v502_v61 = vrot.slane %v486_v47, %v337_v55  ;;  %v2363_v62 = vrot.slane %v493_v49, %v337_v55 }
 0x1e3   :  { %v470_v5 = vmul.f32 %v423_v31, %v309_v52  ;;  %v472_v6 = vmul.f32 %v431_v43, %v309_v52  ;;  %v474_v19 = vmul.f32 %v439_v45, %v309_v52  ;;  %v463_v16 = vmul.f32 %v395_v27, %v2375_v21 }
 0x1e4   :  { %v516_v7 = vrot.slane %v494_v58, %v337_v55  ;;  %v2365_v9 = vrot.slane %v495_v60, %v337_v55  ;;  %v524_v8 = vcombine.high %v502_v61, %v502_v61  ;;  %v2369_v10 = vcombine.high %v2363_v62, %v2363_v62 }
 0x1e5   :  { %v531_v11 = vrot.slane %v502_v61, %v2306_v63  ;;  %v535_v2 = vrot.slane %v502_v61, %v2309_v0  ;;  %v563_v14 = vrot.slane %v2363_v62, %v2306_v63  ;;  %v567_v28 = vrot.slane %v2363_v62, %v2309_v0 }
 0x1e6   :  { %v526_v18 = vcombine.high %v516_v7, %v516_v7  ;;  %v527_v55 = vcombine.high %v2365_v9, %v2365_v9  ;;  %v539_v24 = vrot.slane %v516_v7, %v2306_v63  ;;  %v543_v31 = vrot.slane %v516_v7, %v2309_v0 }
 0x1e7   :  { %v547_v33 = vrot.slane %v524_v8, %v2306_v63  ;;  %v551_v43 = vrot.slane %v524_v8, %v2309_v0  ;;  %v571_v45 = vrot.slane %v2365_v9, %v2306_v63  ;;  %v575_v52 = vrot.slane %v2365_v9, %v2309_v0  ;;  %v313_v8 = vpop.f32.mrf.mxu0 }
 0x1e8   :  { %v555_v47 = vrot.slane %v526_v18, %v2306_v63  ;;  %v559_v49 = vrot.slane %v526_v18, %v2309_v0  ;;  %v579_v58 = vrot.slane %v2369_v10, %v2306_v63  ;;  %v583_v60 = vrot.slane %v2369_v10, %v2309_v0 }
 0x1e9   :  { %v587_v61 = vrot.slane %v527_v55, %v2306_v63  ;;  %v591_v62 = vrot.slane %v527_v55, %v2309_v0  ;;  %v461_v7 = vmul.f32 %v387_v15, %v2375_v21  ;;  %v465_v18 = vmul.f32 %v403_v30, %v2375_v21  ;;  %v315_v38 = vpop.f32.mrf.mxu0 }
 0x1ea   :  { %v467_v59 = vmul.f32 %v411_v34, %v2375_v21  ;;  %v469_v9 = vmul.f32 %v419_v25, %v2375_v21  ;;  %v471_v53 = vmul.f32 %v427_v42, %v2375_v21  ;;  %v473_v51 = vmul.f32 %v435_v1, %v2375_v21 }
 0x1eb   :  { %v608_v10 = vmul.f32 %v531_v11, %v313_v8  ;;  %v610_v50 = vmul.f32 %v539_v24, %v313_v8  ;;  %v612_v63 = vmul.f32 %v547_v33, %v313_v8  ;;  %v614_v48 = vmul.f32 %v555_v47, %v313_v8 }
 0x1ec   :  { %v616_v55 = vmul.f32 %v563_v14, %v313_v8  ;;  %v618_v46 = vmul.f32 %v571_v45, %v313_v8  ;;  %v620_v15 = vmul.f32 %v579_v58, %v313_v8  ;;  %v622_v44 = vmul.f32 %v587_v61, %v313_v8 }
 0x1ed   :  { %v624_v41 = vadd.f32 %v608_v10, %v460_v54  ;;  %v626_v27 = vadd.f32 %v610_v50, %v462_v56  ;;  %v628_v30 = vadd.f32 %v612_v63, %v464_v57  ;;  %v630_v35 = vadd.f32 %v614_v48, %v466_v3 }
 0x1ee   :  { %v632_v34 = vadd.f32 %v616_v55, %v468_v4  ;;  %v634_v32 = vadd.f32 %v618_v46, %v470_v5  ;;  %v636_v25 = vadd.f32 %v620_v15, %v472_v6  ;;  %v638_v29 = vadd.f32 %v622_v44, %v474_v19 }
 0x1ef   :  { %v640_v42 = vmul.f32 1.442695, %v624_v41  ;;  %v644_v26 = vmul.f32 1.442695, %v626_v27  ;;  %v648_v1 = vmul.f32 1.442695, %v628_v30  ;;  %v609_v33 = vmul.f32 %v535_v2, %v315_v38  ;;  %v2408_v2 = vpop.f32.mrf.mxu1 }
 0x1f0   :  { %v652_v11 = vmul.f32 1.442695, %v630_v35  ;;  %v656_v24 = vmul.f32 1.442695, %v632_v34  ;;  %v660_v14 = vmul.f32 1.442695, %v634_v32  ;;  %v611_v54 = vmul.f32 %v543_v31, %v315_v38 }
 0x1f1   :  { %1940 = vpow2.f32 %v640_v42  ;;  %v664_v45 = vmul.f32 1.442695, %v636_v25  ;;  %v668_v47 = vmul.f32 1.442695, %v638_v29  ;;  %v613_v50 = vmul.f32 %v551_v43, %v315_v38  ;;  %3109 = vst [vmem:[#allocation22_spill] sm:$0xff] %v2408_v2 }
 0x1f2   :  { %1942 = vpow2.f32 %v644_v26  ;;  %v615_v56 = vmul.f32 %v559_v49, %v315_v38  ;;  %v617_v48 = vmul.f32 %v567_v28, %v315_v38  ;;  %v619_v57 = vmul.f32 %v575_v52, %v315_v38  ;;  %v2410_v49 = vpop.f32.mrf.mxu1 }
 0x1f3   :  { %1944 = vpow2.f32 %v648_v1  ;;  %v621_v46 = vmul.f32 %v583_v60, %v315_v38  ;;  %v623_v44 = vmul.f32 %v591_v62, %v315_v38  ;;  %v625_v41 = vadd.f32 %v609_v33, %v461_v7 }
 0x1f4   :  { %1946 = vpow2.f32 %v652_v11  ;;  %v627_v3 = vadd.f32 %v611_v54, %v463_v16  ;;  %v629_v35 = vadd.f32 %v613_v50, %v465_v18  ;;  %v631_v4 = vadd.f32 %v615_v56, %v467_v59 }
 0x1f5   :  { %1948 = vpow2.f32 %v656_v24  ;;  %v633_v5 = vadd.f32 %v617_v48, %v469_v9  ;;  %v3108_v29 = vrot.slane %v2337_v22, %v2309_v0  ;;  %v635_v32 = vadd.f32 %v619_v57, %v471_v53  ;;  %v2414_v53 = vpop.f32.mrf.mxu1 }
 0x1f6   :  { %1950 = vpow2.f32 %v660_v14  ;;  %v637_v6 = vadd.f32 %v621_v46, %v473_v51  ;;  %v642_v19 = vmul.f32 1.442695, %v625_v41  ;;  %v646_v28 = vmul.f32 1.442695, %v627_v3 }
 0x1f7   :  { %v475_v26 = vmul.f32 %v3108_v29, %v2375_v21  ;;  %1952 = vpow2.f32 %v664_v45  ;;  %v650_v38 = vmul.f32 1.442695, %v629_v35  ;;  %v654_v31 = vmul.f32 1.442695, %v631_v4 }
 0x1f8   :  { %1954 = vpow2.f32 %v668_v47  ;;  %v658_v59 = vmul.f32 1.442695, %v633_v5  ;;  %v662_v43 = vmul.f32 1.442695, %v635_v32  ;;  %v666_v0 = vmul.f32 1.442695, %v637_v6 }
 0x1f9   :  { %v639_v16 = vadd.f32 %v623_v44, %v475_v26  ;;  %1956 = vpow2.f32 %v642_v19 }
 0x1fa   :  { %1958 = vpow2.f32 %v646_v28 }
 0x1fb   :  { %1960 = vpow2.f32 %v650_v38  ;;  %v670_v22 = vmul.f32 1.442695, %v639_v16 }
 0x1fc   :  { %1962 = vpow2.f32 %v654_v31 }
 0x1fd   :  { %1964 = vpow2.f32 %v658_v59 }
 0x1fe   :  { %v2412_v51 = vpop.eup %1940  ;;  %1966 = vpow2.f32 %v662_v43 }
 0x1ff   :  { %v2416_v21 = vpop.eup %1942  ;;  %1968 = vpow2.f32 %v666_v0  ;;  %v784_v52 = vmul.f32 %v2412_v51, %v2408_v2  ;;  %v912_v58 = vmul.f32 %v2412_v51, %v2414_v53 }
 0x200   :  { %v2423_v61 = vpop.eup %1944  ;;  %1970 = vpow2.f32 %v670_v22  ;;  %v786_v62 = vmul.f32 %v2416_v21, %v2408_v2  ;;  %v2429_v7 = vmul.f32 %v2416_v21, %v2414_v53 }
 0x201   :  { %v2432_v18 = vpop.eup %1946  ;;  %v788_v9 = vmul.f32 %v2423_v61, %v2408_v2  ;;  %v800_v10 = vrot.slane %v784_v52, 4  ;;  %v2438_v63 = vmul.f32 %v2423_v61, %v2414_v53  ;;  %v928_v55 = vrot.slane %v912_v58, 4 }
 0x202   :  { %v2440_v15 = vpop.eup %1948  ;;  %v790_v27 = vmul.f32 %v2432_v18, %v2408_v2  ;;  %v812_v30 = vrot.slane %v786_v62, 4  ;;  %v2446_v34 = vmul.f32 %v2432_v18, %v2414_v53 }
 0x203   :  { %v2449_v42 = vpop.eup %1950  ;;  %v792_v1 = vmul.f32 %v2440_v15, %v2408_v2  ;;  %v801_v11 = vadd.f32 %v800_v10, %v784_v52  ;;  %v824_v24 = vrot.slane %v788_v9, 4  ;;  %v2455_v33 = vmul.f32 %v2440_v15, %v2414_v53 }
 0x204   :  { %v2457_v14 = vpop.eup %1952  ;;  %v2461_v45 = vmul.f32 %v2449_v42, %v2408_v2  ;;  %v813_v47 = vadd.f32 %v812_v30, %v786_v62  ;;  %v836_v54 = vrot.slane %v790_v27, 4  ;;  %v2465_v50 = vmul.f32 %v2449_v42, %v2414_v53 }
 0x205   :  { %v2467_v56 = vpop.eup %1954  ;;  %v2471_v48 = vmul.f32 %v2457_v14, %v2408_v2  ;;  %v802_v57 = vrot.slane %v801_v11, 2  ;;  %v825_v46 = vadd.f32 %v824_v24, %v788_v9  ;;  %v848_v44 = vrot.slane %v792_v1, 4 }
 0x206   :  { %3110 = vst [vmem:[#allocation23_spill] sm:$0xff] %v2461_v45  ;;  %v2473_v41 = vpop.eup %1956  ;;  %v814_v3 = vrot.slane %v813_v47, 2  ;;  %v837_v35 = vadd.f32 %v836_v54, %v790_v27  ;;  %v2478_v5 = vmul.f32 %v2457_v14, %v2414_v53  ;;  %v929_v59 = vadd.f32 %v928_v55, %v912_v58 }
 0x207   :  { %3111 = vst [vmem:[#allocation24_spill] sm:$0xff] %v2471_v48  ;;  %v2480_v29 = vpop.eup %1958  ;;  %v803_v26 = vadd.f32 %v802_v57, %v801_v11  ;;  %v826_v32 = vrot.slane %v825_v46, 2  ;;  %v2482_v6 = vadd.f32 %v848_v44, %v792_v1  ;;  %v785_v19 = vmul.f32 %v2473_v41, %v2410_v49 }
 0x208   :  { %v2486_v28 = vpop.eup %1960  ;;  %v815_v38 = vadd.f32 %v814_v3, %v813_v47  ;;  %v838_v16 = vrot.slane %v837_v35, 2  ;;  %v787_v31 = vmul.f32 %v2480_v29, %v2410_v49  ;;  %v930_v20 = vrot.slane %v929_v59, 2 }
 0x209   :  { %3112 = vst [vmem:[#allocation25_spill] sm:$0xff] %v2482_v6  ;;  %v2490_v43 = vpop.eup %1962  ;;  %v804_v0 = vrot.slane %v803_v26, 1  ;;  %v2492_v22 = vadd.f32 %v826_v32, %v825_v46  ;;  %v789_v62 = vmul.f32 %v2486_v28, %v2410_v49  ;;  %v806_v1 = vrot.slane %v785_v19, 4 }
 0x20a   :  { %v2497_v9 = vpop.eup %1964  ;;  %v816_v10 = vrot.slane %v815_v38, 1  ;;  %v2499_v27 = vadd.f32 %v838_v16, %v837_v35  ;;  %v791_v30 = vmul.f32 %v2490_v43, %v2410_v49  ;;  %v818_v47 = vrot.slane %v787_v31, 4 }
 0x20b   :  { %3113 = vst [vmem:[#allocation26_spill] sm:$0xff] %v2492_v22  ;;  %v2503_v58 = vpop.eup %1966  ;;  %v2505_v55 = vadd.f32 %v804_v0, %v803_v26  ;;  %v793_v24 = vmul.f32 %v2497_v9, %v2410_v49  ;;  %v807_v44 = vadd.f32 %v806_v1, %v785_v19  ;;  %v830_v3 = vrot.slane %v789_v62, 4 }
 0x20c   :  { %3114 = vst [vmem:[#allocation27_spill] sm:$0xff] %v2499_v27  ;;  %v2510_v54 = vpop.eup %1968  ;;  %v2512_v57 = vadd.f32 %v816_v10, %v815_v38  ;;  %v795_v46 = vmul.f32 %v2503_v58, %v2410_v49  ;;  %v819_v32 = vadd.f32 %v818_v47, %v787_v31  ;;  %v842_v16 = vrot.slane %v791_v30, 4 }
 0x20d   :  { %3115 = vst [vmem:[#allocation28_spill] sm:$0xff] %v2505_v55  ;;  %v2516_v35 = vpop.eup %1970  ;;  %v2520_v26 = vmul.f32 %v2510_v54, %v2410_v49  ;;  %v854_v0 = vrot.slane %v793_v24, 4  ;;  %v808_v38 = vrot.slane %v807_v44, 2  ;;  %v831_v10 = vadd.f32 %v830_v3, %v789_v62 }
 0x20e   :  { %3116 = vst [vmem:[#allocation29_spill] sm:$0xff] %v2512_v57  ;;  %v2524_v4 = vmul.f32 %v2516_v35, %v2410_v49  ;;  %v866_v52 = vrot.slane %v795_v46, 4  ;;  %v820_v11 = vrot.slane %v819_v32, 2  ;;  %v843_v8 = vadd.f32 %v842_v16, %v791_v30 }
 0x20f   :  { %v855_v19 = vadd.f32 %v854_v0, %v793_v24  ;;  %v809_v60 = vadd.f32 %v808_v38, %v807_v44  ;;  %v832_v25 = vrot.slane %v831_v10, 2  ;;  %v3117_v49 = vrot.slane %v2429_v7, 4  ;;  %v325_v38 = vpop.f32.mrf.mxu1 }
 0x210   :  { %v2527_v23 = vadd.f32 %v866_v52, %v795_v46  ;;  %v821_v31 = vadd.f32 %v820_v11, %v819_v32  ;;  %v844_v47 = vrot.slane %v843_v8, 2  ;;  %v931_v3 = vadd.f32 %v930_v20, %v929_v59 }
 0x211   :  { %v856_v17 = vrot.slane %v855_v19, 2  ;;  %v941_v13 = vadd.f32 %v3117_v49, %v2429_v7  ;;  %v810_v12 = vrot.slane %v809_v60, 1  ;;  %v833_v62 = vadd.f32 %v832_v25, %v831_v10 }
 0x212   :  { %v952_v30 = vrot.slane %v2438_v63, 4  ;;  %v822_v24 = vrot.slane %v821_v31, 1  ;;  %v2533_v16 = vadd.f32 %v844_v47, %v843_v8  ;;  %v932_v32 = vrot.slane %v931_v3, 1 }
 0x213   :  { %v2535_v44 = vadd.f32 %v856_v17, %v855_v19  ;;  %v942_v52 = vrot.slane %v941_v13, 2  ;;  %v2537_v46 = vadd.f32 %v810_v12, %v809_v60  ;;  %v834_v11 = vrot.slane %v833_v62, 1 }
 0x214   :  { %v953_v0 = vadd.f32 %v952_v30, %v2438_v63  ;;  %v2540_v1 = vadd.f32 %v822_v24, %v821_v31  ;;  %v964_v25 = vrot.slane %v2446_v34, 4  ;;  %v2546_v8 = vadd.f32 %v932_v32, %v931_v3 }
 0x215   :  { %v943_v20 = vadd.f32 %v942_v52, %v941_v13  ;;  %v2544_v59 = vadd.f32 %v834_v11, %v833_v62  ;;  %v976_v12 = vrot.slane %v2455_v33, 4  ;;  %v913_v19 = vmul.f32 %v2473_v41, %v325_v38 }
 0x216   :  { %v954_v17 = vrot.slane %v953_v0, 2  ;;  %v965_v10 = vadd.f32 %v964_v25, %v2446_v34  ;;  %v915_v47 = vmul.f32 %v2480_v29, %v325_v38  ;;  %v917_v49 = vmul.f32 %v2486_v28, %v325_v38 }
 0x217   :  { %v944_v60 = vrot.slane %v943_v20, 1  ;;  %v2555_v13 = vadd.f32 %v976_v12, %v2455_v33  ;;  %v919_v30 = vmul.f32 %v2490_v43, %v325_v38  ;;  %v921_v34 = vmul.f32 %v2497_v9, %v325_v38 }
 0x218   :  { %v2552_v31 = vadd.f32 %v954_v17, %v953_v0  ;;  %v966_v3 = vrot.slane %v965_v10, 2  ;;  %v923_v11 = vmul.f32 %v2503_v58, %v325_v38  ;;  %v2567_v33 = vmul.f32 %v2510_v54, %v325_v38 }
 0x219   :  { %v2559_v62 = vadd.f32 %v944_v60, %v943_v20  ;;  %v2572_v0 = vmul.f32 %v2516_v35, %v325_v38  ;;  %v934_v20 = vrot.slane %v913_v19, 4  ;;  %v946_v25 = vrot.slane %v915_v47, 4 }
 0x21a   :  { %v2569_v32 = vadd.f32 %v966_v3, %v965_v10  ;;  %v958_v17 = vrot.slane %v917_v49, 4  ;;  %v970_v12 = vrot.slane %v919_v30, 4  ;;  %v982_v60 = vrot.slane %v921_v34, 4 }
 0x21b   :  { %v994_v7 = vrot.slane %v923_v11, 4  ;;  %v935_v63 = vadd.f32 %v934_v20, %v913_v19  ;;  %v947_v24 = vadd.f32 %v946_v25, %v915_v47  ;;  %v678_v39 = vrot.slane %v2473_v41, 4 }
 0x21c   :  { %v959_v36 = vadd.f32 %v958_v17, %v917_v49  ;;  %v971_v40 = vadd.f32 %v970_v12, %v919_v30  ;;  %v983_v37 = vadd.f32 %v982_v60, %v921_v34  ;;  %v690_v55 = vrot.slane %v2480_v29, 4 }
 0x21d   :  { %v2576_v10 = vadd.f32 %v994_v7, %v923_v11  ;;  %v936_v3 = vrot.slane %v935_v63, 2  ;;  %v948_v38 = vrot.slane %v947_v24, 2  ;;  %v679_v57 = vadd.f32 %v2473_v41, %v678_v39 }
 0x21e   :  { %v960_v48 = vrot.slane %v959_v36, 2  ;;  %v972_v45 = vrot.slane %v971_v40, 2  ;;  %v984_v6 = vrot.slane %v983_v37, 2  ;;  %v702_v19 = vrot.slane %v2486_v28, 4 }
 0x21f   :  { %v937_v47 = vadd.f32 %v936_v3, %v935_v63  ;;  %v949_v20 = vadd.f32 %v948_v38, %v947_v24  ;;  %v680_v25 = vrot.slane %v679_v57, 2  ;;  %v691_v49 = vadd.f32 %v2480_v29, %v690_v55 }
 0x220   :  { %v961_v30 = vadd.f32 %v960_v48, %v959_v36  ;;  %v973_v34 = vadd.f32 %v972_v45, %v971_v40  ;;  %v985_v7 = vadd.f32 %v984_v6, %v983_v37  ;;  %v703_v11 = vadd.f32 %v2486_v28, %v702_v19 }
 0x221   :  { %v938_v17 = vrot.slane %v937_v47, 1  ;;  %v950_v12 = vrot.slane %v949_v20, 1  ;;  %v681_v39 = vadd.f32 %v680_v25, %v679_v57  ;;  %v692_v41 = vrot.slane %v691_v49, 2 }
 0x222   :  { %v962_v60 = vrot.slane %v961_v30, 1  ;;  %v974_v52 = vrot.slane %v973_v34, 1  ;;  %v704_v27 = vrot.slane %v703_v11, 2  ;;  %v714_v22 = vrot.slane %v2490_v43, 4 }
 0x223   :  { %v2584_v2 = vadd.f32 %v938_v17, %v937_v47  ;;  %v2586_v63 = vadd.f32 %v950_v12, %v949_v20  ;;  %v682_v24 = vrot.slane %v681_v39, 1  ;;  %v693_v29 = vadd.f32 %v692_v41, %v691_v49 }
 0x224   :  { %v2588_v36 = vadd.f32 %v962_v60, %v961_v30  ;;  %v705_v37 = vadd.f32 %v704_v27, %v703_v11  ;;  %v715_v40 = vadd.f32 %v2490_v43, %v714_v22  ;;  %v726_v45 = vrot.slane %v2497_v9, 4 }
 0x225   :  { %v683_v48 = vadd.f32 %v682_v24, %v681_v39  ;;  %v694_v6 = vrot.slane %v693_v29, 1  ;;  %v738_v28 = vrot.slane %v2503_v58, 4  ;;  %v750_v55 = vrot.slane %v2510_v54, 4 }
 0x226   :  { %v706_v57 = vrot.slane %v705_v37, 1  ;;  %v716_v3 = vrot.slane %v715_v40, 2  ;;  %v727_v38 = vadd.f32 %v2497_v9, %v726_v45  ;;  %v762_v19 = vrot.slane %v2516_v35, 4 }
 0x227   :  { %v695_v47 = vadd.f32 %v694_v6, %v693_v29  ;;  %v739_v20 = vadd.f32 %v2503_v58, %v738_v28  ;;  %v751_v27 = vadd.f32 %v2510_v54, %v750_v55  ;;  %1972 = vrcp.f32 %v683_v48 }
 0x228   :  { %v707_v43 = vadd.f32 %v706_v57, %v705_v37  ;;  %v717_v22 = vadd.f32 %v716_v3, %v715_v40  ;;  %v728_v25 = vrot.slane %v727_v38, 2  ;;  %v763_v49 = vadd.f32 %v2516_v35, %v762_v19 }
 0x229   :  { %v740_v30 = vrot.slane %v739_v20, 2  ;;  %v752_v11 = vrot.slane %v751_v27, 2  ;;  %1974 = vrcp.f32 %v695_v47  ;;  %v2599_v17 = vadd.f32 %v974_v52, %v973_v34 }
 0x22a   :  { %v718_v12 = vrot.slane %v717_v22, 1  ;;  %v729_v9 = vadd.f32 %v728_v25, %v727_v38  ;;  %v764_v39 = vrot.slane %v763_v49, 2  ;;  %1976 = vrcp.f32 %v707_v43 }
 0x22b   :  { %v741_v41 = vadd.f32 %v740_v30, %v739_v20  ;;  %v753_v60 = vadd.f32 %v752_v11, %v751_v27  ;;  %v986_v58 = vrot.slane %v985_v7, 1  ;;  %v996_v54 = vrot.slane %v2576_v10, 2 }
 0x22c   :  { %v719_v24 = vadd.f32 %v718_v12, %v717_v22  ;;  %v730_v29 = vrot.slane %v729_v9, 1  ;;  %v765_v37 = vadd.f32 %v764_v39, %v763_v49  ;;  %v3118_v35 = vrot.slane %v2567_v33, 4 }
 0x22d   :  { %v742_v45 = vrot.slane %v741_v41, 1  ;;  %v754_v48 = vrot.slane %v753_v60, 1  ;;  %v2605_v52 = vadd.f32 %v986_v58, %v985_v7  ;;  %v997_v34 = vadd.f32 %v996_v54, %v2576_v10 }
 0x22e   :  { %v1007_v40 = vadd.f32 %v3118_v35, %v2567_v33  ;;  %v731_v6 = vadd.f32 %v730_v29, %v729_v9  ;;  %v766_v28 = vrot.slane %v765_v37, 1  ;;  %1978 = vrcp.f32 %v719_v24 }
 0x22f   :  { %v743_v57 = vadd.f32 %v742_v45, %v741_v41  ;;  %v755_v3 = vadd.f32 %v754_v48, %v753_v60  ;;  %v998_v38 = vrot.slane %v997_v34, 1  ;;  %v1018_v19 = vrot.slane %v2572_v0, 4 }
 0x230   :  { %v1008_v55 = vrot.slane %v1007_v40, 2  ;;  %v767_v47 = vadd.f32 %v766_v28, %v765_v37  ;;  %1980 = vrcp.f32 %v731_v6  ;;  %v3119_v33 = vrot.slane %v2412_v51, 4 }
 0x231   :  { %1982 = vrcp.f32 %v743_v57  ;;  %v2612_v7 = vadd.f32 %v998_v38, %v997_v34  ;;  %v1019_v10 = vadd.f32 %v1018_v19, %v2572_v0  ;;  %v3120_v43 = vrot.slane %v2416_v21, 4 }
 0x232   :  { %v1009_v20 = vadd.f32 %v1008_v55, %v1007_v40  ;;  %v673_v27 = vadd.f32 %v2412_v51, %v3119_v33  ;;  %1984 = vrcp.f32 %v755_v3  ;;  %v696_v30 = vrot.slane %v2423_v61, 4 }
 0x233   :  { %v685_v22 = vadd.f32 %v2416_v21, %v3120_v43  ;;  %1986 = vrcp.f32 %v767_v47  ;;  %v1020_v11 = vrot.slane %v1019_v10, 2  ;;  %v708_v51 = vrot.slane %v2432_v18, 4 }
 0x234   :  { %v1010_v25 = vrot.slane %v1009_v20, 1  ;;  %v674_v49 = vrot.slane %v673_v27, 2  ;;  %v2620_v9 = vpop.eup %1972  ;;  %v697_v41 = vadd.f32 %v2423_v61, %v696_v30  ;;  %v720_v21 = vrot.slane %v2440_v15, 4 }
 0x235   :  { %v686_v12 = vrot.slane %v685_v22, 2  ;;  %v1021_v60 = vadd.f32 %v1020_v11, %v1019_v10  ;;  %v1025_v58 = vmul.f32 %v2620_v9, %v2584_v2  ;;  %v709_v24 = vadd.f32 %v2432_v18, %v708_v51 }
 0x236   :  { %v1011_v39 = vadd.f32 %v1010_v25, %v1009_v20  ;;  %v675_v0 = vadd.f32 %v674_v49, %v673_v27  ;;  %v2627_v29 = vpop.eup %1974  ;;  %v698_v35 = vrot.slane %v697_v41, 2  ;;  %v721_v40 = vadd.f32 %v2440_v15, %v720_v21 }
 0x237   :  { %v687_v54 = vadd.f32 %v686_v12, %v685_v22  ;;  %v732_v45 = vrot.slane %v2449_v42, 4  ;;  %v2631_v48 = vpop.eup %1976  ;;  %v1022_v61 = vrot.slane %v1021_v60, 1  ;;  %v1027_v34 = vmul.f32 %v2627_v29, %v2586_v63 }
 0x238   :  { %v676_v37 = vrot.slane %v675_v0, 1  ;;  %v1062_v6 = vpack.c.bf16 %v1025_v58, %v1025_v58  ;;  %v1029_v18 = vmul.f32 %v2631_v48, %v2588_v36  ;;  %v699_v55 = vadd.f32 %v698_v35, %v697_v41 }
 0x239   :  { %v688_v2 = vrot.slane %v687_v54, 1  ;;  %v710_v57 = vrot.slane %v709_v24, 2  ;;  %v1023_v3 = vadd.f32 %v1022_v61, %v1021_v60  ;;  %v1064_v38 = vpack.c.bf16 %v1027_v34, %v1027_v34 }
 0x23a   :  { %v677_v28 = vadd.f32 %v676_v37, %v675_v0  ;;  %v1099_v15 = vunpack.c.l.b16 %v1062_v6  ;;  %v1066_v47 = vpack.c.bf16 %v1029_v18, %v1029_v18  ;;  %v700_v20 = vrot.slane %v699_v55, 1 }
 0x23b   :  { %v689_v19 = vadd.f32 %v688_v2, %v687_v54  ;;  %v711_v33 = vadd.f32 %v710_v57, %v709_v24  ;;  %v722_v27 = vrot.slane %v721_v40, 2  ;;  %v2637_v63 = vpop.eup %1978  ;;  %v1101_v10 = vunpack.c.l.b16 %v1064_v38 }
 0x23c   :  { %v733_v43 = vadd.f32 %v2449_v42, %v732_v45  ;;  %v744_v36 = vrot.slane %v2457_v14, 4  ;;  %v756_v22 = vrot.slane %v2467_v56, 4  ;;  %v1031_v25 = vmul.f32 %v2637_v63, %v2599_v17 }
 0x23d   :  { %v1103_v49 = vunpack.c.l.b16 %v1066_v47  ;;  %v701_v30 = vadd.f32 %v700_v20, %v699_v55  ;;  %v712_v11 = vrot.slane %v711_v33, 1  ;;  %v2644_v12 = vpop.eup %1980  ;;  %v1128_v51 = vsel %vm3121_vm13, %v1101_v10, %v1099_v15 }
 0x23e   :  { %v723_v0 = vadd.f32 %v722_v27, %v721_v40  ;;  %v734_v41 = vrot.slane %v733_v43, 2  ;;  %v745_v21 = vadd.f32 %v2457_v14, %v744_v36  ;;  %v2648_v42 = vpop.eup %1982  ;;  %v1033_v60 = vmul.f32 %v2644_v12, %v2605_v52 }
 0x23f   :  { %v1068_v58 = vpack.c.bf16 %v1031_v25, %v1031_v25  ;;  %v1129_v17 = vsel %vm3122_vm14, %v1103_v49, %v1128_v51  ;;  %v713_v54 = vadd.f32 %v712_v11, %v711_v33  ;;  %v2653_v24 = vpop.eup %1984  ;;  %v1035_v37 = vmul.f32 %v2648_v42, %v2612_v7 }
 0x240   :  { %v724_v35 = vrot.slane %v723_v0, 1  ;;  %v735_v40 = vadd.f32 %v734_v41, %v733_v43  ;;  %v746_v45 = vrot.slane %v745_v21, 2  ;;  %v2657_v61 = vpop.eup %1986  ;;  %v1037_v14 = vmul.f32 %v2653_v24, %v1011_v39 }
 0x241   :  { %v1070_v34 = vpack.c.bf16 %v1033_v60, %v1033_v60  ;;  %v1105_v6 = vunpack.c.l.b16 %v1068_v58  ;;  %v757_v52 = vadd.f32 %v2467_v56, %v756_v22  ;;  %v1039_v2 = vmul.f32 %v2657_v61, %v1023_v3 }
 0x242   :  { %v1072_v18 = vpack.c.bf16 %v1035_v37, %v1035_v37  ;;  %v725_v55 = vadd.f32 %v724_v35, %v723_v0  ;;  %v736_v57 = vrot.slane %v735_v40, 1  ;;  %v1074_v38 = vpack.c.bf16 %v1037_v14, %v1037_v14 }
 0x243   :  { %v1107_v15 = vunpack.c.l.b16 %v1070_v34  ;;  %vm3123_vm13 = vcmask 1043459   ;;  %v747_v47 = vadd.f32 %v746_v45, %v745_v21  ;;  %v1076_v20 = vpack.c.bf16 %v1039_v2, %v1039_v2 }
 0x244   :  { %v1130_v7 = vsel %vm3123_vm13, %v1105_v6, %v1129_v17  ;;  %v1109_v33 = vunpack.c.l.b16 %v1072_v18  ;;  %v737_v27 = vadd.f32 %v736_v57, %v735_v40  ;;  %v758_v10 = vrot.slane %v757_v52, 2 }
 0x245   :  { %v1111_v43 = vunpack.c.l.b16 %v1074_v38  ;;  %vm3124_vm14 = vcmask 1044484   ;;  %v748_v36 = vrot.slane %v747_v47, 1  ;;  %1988 = vrcp.f32 %v677_v28 }
 0x246   :  { %v1131_v39 = vsel %vm3124_vm14, %v1107_v15, %v1130_v7  ;;  %v1113_v22 = vunpack.c.l.b16 %v1076_v20  ;;  %v759_v25 = vadd.f32 %v758_v10, %v757_v52  ;;  %1990 = vrcp.f32 %v689_v19 }
 0x247   :  { %v1132_v3 = vsel %vm3125_vm15, %v1109_v33, %v1131_v39  ;;  %v749_v11 = vadd.f32 %v748_v36, %v747_v47  ;;  %1992 = vrcp.f32 %v701_v30  ;;  %v926_v51 = vmul.f32 %v2467_v56, %v2414_v53 }
 0x248   :  { %v1133_v49 = vsel %vm3126_vm12, %v1111_v43, %v1132_v3  ;;  %vm3127_vm13 = vcmask 1047559   ;;  %v760_v41 = vrot.slane %v759_v25, 1  ;;  %1994 = vrcp.f32 %v713_v54 }
 0x249   :  { %v1134_v0 = vsel %vm3127_vm13, %v1113_v22, %v1133_v49  ;;  %v3128_v21 = vrot.slane %v2552_v31, 1  ;;  %1996 = vrcp.f32 %v725_v55  ;;  %v968_v58 = vrot.slane %v2569_v32, 1 }
 0x24a   :  { %v1136_v60 = vpack.c.b16 %v1134_v0, %v1134_v0  ;;  %v3129_v19 = vrot.slane %v2555_v13, 2  ;;  %v761_v30 = vadd.f32 %v760_v41, %v759_v25  ;;  %1998 = vrcp.f32 %v737_v27 }
 0x24b   :  { %v957_v28 = vadd.f32 %v3128_v21, %v2552_v31  ;;  %v3130_v53 = vrot.slane %v2465_v50, 4  ;;  %v1000_v54 = vrot.slane %v2478_v5, 4  ;;  %vm3131_vm12 = vcmask 1043456  }
 0x24c   :  { %v979_v17 = vadd.f32 %v3129_v19, %v2555_v13  ;;  %1746 = vmatprep.subr.msk.bf16.mxu1 %vm3131_vm12, %v1136_v60  ;;  %2000 = vrcp.f32 %v749_v11  ;;  %v969_v31 = vadd.f32 %v968_v58, %v2569_v32  ;;  %v1012_v40 = vrot.slane %v926_v51, 4 }
 0x24d   :  { %v989_v37 = vadd.f32 %v3130_v53, %v2465_v50  ;;  %2002 = vrcp.f32 %v761_v30  ;;  %v1001_v14 = vadd.f32 %v1000_v54, %v2478_v5  ;;  %v3132_v13 = vrot.slane %v2533_v16, 1 }
 0x24e   :  { %v980_v35 = vrot.slane %v979_v17, 1  ;;  %v1013_v52 = vadd.f32 %v1012_v40, %v926_v51  ;;  %v858_v50 = vrot.slane %v2535_v44, 1  ;;  %v868_v2 = vrot.slane %v2527_v23, 2 }
 0x24f   :  { %v990_v45 = vrot.slane %v989_v37, 2  ;;  %v847_v34 = vadd.f32 %v3132_v13, %v2533_v16  ;;  %v1002_v55 = vrot.slane %v1001_v14, 2  ;;  %v3133_v32 = vrot.slane %v2520_v26, 4 }
 0x250   :  { %v981_v6 = vadd.f32 %v980_v35, %v979_v17  ;;  %v890_v38 = vrot.slane %v2524_v4, 4  ;;  %v1014_v15 = vrot.slane %v1013_v52, 2  ;;  %v859_v5 = vadd.f32 %v858_v50, %v2535_v44 }
 0x251   :  { %v991_v18 = vadd.f32 %v990_v45, %v989_v37  ;;  %v879_v57 = vadd.f32 %v3133_v32, %v2520_v26  ;;  %v869_v7 = vadd.f32 %v868_v2, %v2527_v23  ;;  %v2696_v16 = vmul.f32 %v2620_v9, %v2537_v46 }
 0x252   :  { %v1003_v20 = vadd.f32 %v1002_v55, %v1001_v14  ;;  %v891_v27 = vadd.f32 %v890_v38, %v2524_v4  ;;  %v1015_v10 = vadd.f32 %v1014_v15, %v1013_v52  ;;  %v2701_v26 = vmul.f32 %v2627_v29, %v2540_v1  ;;  %v2707_v23 = vpop.eup %1988 }
 0x253   :  { %v992_v47 = vrot.slane %v991_v18, 1  ;;  %v880_v33 = vrot.slane %v879_v57, 2  ;;  %v870_v43 = vrot.slane %v869_v7, 1  ;;  %v2705_v44 = vmul.f32 %v2631_v48, %v2544_v59  ;;  %v2709_v22 = vpop.eup %1990 }
 0x254   :  { %v1004_v46 = vrot.slane %v1003_v20, 1  ;;  %v892_v36 = vrot.slane %v891_v27, 2  ;;  %v1016_v3 = vrot.slane %v1015_v10, 1  ;;  %v1024_v4 = vmul.f32 %v2707_v23, %v2546_v8  ;;  %v2714_v29 = vpop.eup %1992 }
 0x255   :  { %v993_v39 = vadd.f32 %v992_v47, %v991_v18  ;;  %v881_v9 = vadd.f32 %v880_v33, %v879_v57  ;;  %v871_v25 = vadd.f32 %v870_v43, %v869_v7  ;;  %v903_v1 = vmul.f32 %v2637_v63, %v847_v34  ;;  %v2718_v51 = vpop.eup %1994 }
 0x256   :  { %v1005_v49 = vadd.f32 %v1004_v46, %v1003_v20  ;;  %v1026_v59 = vmul.f32 %v2709_v22, %v2559_v62  ;;  %v893_v11 = vadd.f32 %v892_v36, %v891_v27  ;;  %v1017_v0 = vadd.f32 %v1016_v3, %v1015_v10  ;;  %v2722_v8 = vpop.eup %1996 }
 0x257   :  { %v882_v48 = vrot.slane %v881_v9, 1  ;;  %v1028_v41 = vmul.f32 %v2714_v29, %v957_v28  ;;  %v1061_v21 = vpack.c.bf16 %v1024_v4, %v1024_v4  ;;  %v905_v60 = vmul.f32 %v2644_v12, %v859_v5  ;;  %v2725_v30 = vpop.eup %1998 }
 0x258   :  { %v1030_v63 = vmul.f32 %v2718_v51, %v969_v31  ;;  %v1063_v58 = vpack.c.bf16 %v1026_v59, %v1026_v59  ;;  %v894_v17 = vrot.slane %v893_v11, 1  ;;  %v1032_v62 = vmul.f32 %v2722_v8, %v981_v6 }
 0x259   :  { %v883_v19 = vadd.f32 %v882_v48, %v881_v9  ;;  %v1065_v53 = vpack.c.bf16 %v1028_v41, %v1028_v41  ;;  %v1098_v37 = vunpack.c.l.b16 %v1061_v21  ;;  %v907_v54 = vmul.f32 %v2648_v42, %v871_v25  ;;  %v2729_v35 = vpop.eup %2000 }
 0x25a   :  { %v1034_v28 = vmul.f32 %v2725_v30, %v993_v39  ;;  %v1067_v12 = vpack.c.bf16 %v1030_v63, %v1030_v63  ;;  %v1100_v40 = vunpack.c.l.b16 %v1063_v58  ;;  %v895_v45 = vadd.f32 %v894_v17, %v893_v11  ;;  %v2732_v14 = vpop.eup %2002  ;;  %v1925_v63 = vld [vmem:[%s2987_s2 + $0x8] sm:$0xff]   ;;  %v3145_v58 = vld [vmem:[#allocation26_spill] sm:$0xff] }
 0x25b   :  { %v1036_v31 = vmul.f32 %v2729_v35, %v1005_v49  ;;  %v1069_v13 = vpack.c.bf16 %v1032_v62, %v1032_v62  ;;  %v1102_v34 = vunpack.c.l.b16 %v1065_v53  ;;  %v909_v52 = vmul.f32 %v2653_v24, %v883_v19  ;;  %v3147_v62 = vld [vmem:[#allocation27_spill] sm:$0xff] }
 0x25c   :  { %v1038_v6 = vmul.f32 %v2732_v14, %v1017_v0  ;;  %v1071_v50 = vpack.c.bf16 %v1034_v28, %v1034_v28  ;;  %v1104_v2 = vunpack.c.l.b16 %v1067_v12  ;;  %vm3134_vm15 = vcmask 1041409   ;;  %v3151_v12 = vld [vmem:[#allocation23_spill] sm:$0xff] }
 0x25d   :  { %v1115_v42 = vsel %vm3134_vm15, %v1100_v40, %v1098_v37  ;;  %v1073_v18 = vpack.c.bf16 %v1036_v31, %v1036_v31  ;;  %v1106_v55 = vunpack.c.l.b16 %v1069_v13  ;;  %vm3135_vm14 = vcmask 1042434   ;;  %v3153_v31 = vld [vmem:[#allocation24_spill] sm:$0xff] }
 0x25e   :  { %v1117_v32 = vsel %vm3135_vm14, %v1102_v34, %v1115_v42  ;;  %v911_v57 = vmul.f32 %v2657_v61, %v895_v45  ;;  %v1075_v38 = vpack.c.bf16 %v1038_v6, %v1038_v6  ;;  %v1108_v15 = vunpack.c.l.b16 %v1071_v50  ;;  %v3155_v50 = vld [vmem:[#allocation28_spill] sm:$0xff] }
 0x25f   :  { %vm3136_vm13 = vcmask 1043459   ;;  %v1043_v7 = vpack.c.bf16 %v2696_v16, %v2696_v16  ;;  %vm3053_vm12 = vcmask 64512   ;;  %v1110_v24 = vunpack.c.l.b16 %v1073_v18 }
 0x260   :  { %v1119_v5 = vsel %vm3136_vm13, %v1104_v2, %v1117_v32  ;;  %v1045_v20 = vpack.c.bf16 %v2701_v26, %v2701_v26  ;;  %v1047_v33 = vpack.c.bf16 %v2705_v44, %v2705_v44  ;;  %v1112_v27 = vunpack.c.l.b16 %v1075_v38 }
 0x261   :  { %v1121_v47 = vsel %vm3137_vm11, %v1106_v55, %v1119_v5  ;;  %vm3138_vm15 = vcmask 1045509   ;;  %v1049_v10 = vpack.c.bf16 %v903_v1, %v903_v1  ;;  %v1051_v43 = vpack.c.bf16 %v905_v60, %v905_v60  ;;  %v3142_v1 = vld [vmem:[#allocation22_spill] sm:$0xff] }
 0x262   :  { %v1123_v61 = vsel %vm3138_vm15, %v1108_v15, %v1121_v47  ;;  %vm3139_vm14 = vcmask 1046534   ;;  %v1053_v46 = vpack.c.bf16 %v907_v54, %v907_v54  ;;  %v1055_v9 = vpack.c.bf16 %v909_v52, %v909_v52  ;;  %v3149_v54 = vld [vmem:[#allocation25_spill] sm:$0xff] }
 0x263   :  { %v1125_v39 = vsel %vm3139_vm14, %v1110_v24, %v1123_v61  ;;  %v1057_v16 = vpack.c.bf16 %v911_v57, %v911_v57  ;;  %vm3140_vm13 = vcmask 1047559   ;;  %v1213_v3 = vunpack.c.l.b16 %v1043_v7  ;;  %v3158_v15 = vld [vmem:[#allocation29_spill] sm:$0xff] }
 0x264   :  { %v1127_v36 = vsel %vm3140_vm13, %v1112_v27, %v1125_v39  ;;  %v1215_v4 = vunpack.c.l.b16 %v1045_v20  ;;  %v1217_v25 = vunpack.c.l.b16 %v1047_v33  ;;  %v1219_v26 = vunpack.c.l.b16 %v1049_v10 }
 0x265   :  { %v1135_v49 = vpack.c.b16 %v1127_v36, %v1127_v36  ;;  %v1221_v59 = vunpack.c.l.b16 %v1051_v43  ;;  %v1223_v48 = vunpack.c.l.b16 %v1053_v46  ;;  %v1225_v44 = vunpack.c.l.b16 %v1055_v9 }
 0x266   :  { %v1227_v11 = vunpack.c.l.b16 %v1057_v16  ;;  %vm3141_vm11 = vcmask 1041409   ;;  %v798_v41 = vmul.f32 %v2467_v56, %v3142_v1  ;;  %vm3143_vm15 = vcmask 1043456  }
 0x267   :  { %v1235_v0 = vsel %vm3141_vm11, %v1215_v4, %v1213_v3  ;;  %v1143_v21 = vsel %vm3143_vm15, %v1135_v49, 0  ;;  %vm3144_vm14 = vcmask 1042434   ;;  %v3146_v19 = vrot.slane %v3145_v58, 1 }
 0x268   :  { %v1236_v60 = vsel %vm3144_vm14, %v1217_v25, %v1235_v0  ;;  %v840_v53 = vrot.slane %v3147_v62, 1  ;;  %1163 = vmatpush1.bf16.msra.mxu1 %v1143_v21  ;;  %vm3148_vm13 = vcmask 1043459   ;;  %v3150_v56 = vrot.slane %v3149_v54, 2 }
 0x269   :  { %v829_v17 = vadd.f32 %v3146_v19, %v3145_v58  ;;  %v1237_v37 = vsel %vm3148_vm13, %v1219_v26, %v1236_v60  ;;  %v3152_v40 = vrot.slane %v3151_v12, 4  ;;  %v872_v13 = vrot.slane %v3153_v31, 4 }
 0x26a   :  { %v851_v28 = vadd.f32 %v3150_v56, %v3149_v54  ;;  %vm3154_vm11 = vcmask 1044484   ;;  %v841_v52 = vadd.f32 %v840_v53, %v3147_v62  ;;  %v884_v6 = vrot.slane %v798_v41, 4 }
 0x26b   :  { %v861_v45 = vadd.f32 %v3152_v40, %v3151_v12  ;;  %v1238_v34 = vsel %vm3154_vm11, %v1221_v59, %v1237_v37  ;;  %v896_v2 = vmul.f32 %v2707_v23, %v3155_v50  ;;  %vm3156_vm15 = vcmask 1045509   ;;  %1747 = vmatmul.mubr.msk.bf16.vlgmr.msra.gmra.mxu1 %vm3053_vm12, %v1925_v63  ;;  %v1320_v40 = vld [vmem:[%s2989_s4 + $0x30] sm:$0xff]  ;;  %v1314_v50 = vld [vmem:[%s2989_s4] sm:$0xff] }
 0x26c   :  { %v1239_v42 = vsel %vm3156_vm15, %v1223_v48, %v1238_v34  ;;  %v852_v18 = vrot.slane %v851_v28, 1  ;;  %v873_v32 = vadd.f32 %v872_v13, %v3153_v31  ;;  %vm3157_vm14 = vcmask 1046534   ;;  %1354 = vperm.xlu0 %1920, %v1320_v40   ;;  %v1321_v31 = vld [vmem:[%s2989_s4 + $0x38] sm:$0xff]  ;;  %v1319_v13 = vld [vmem:[%s2989_s4 + $0x28] sm:$0xff] }
 0x26d   :  { %v862_v55 = vrot.slane %v861_v45, 2  ;;  %v1240_v57 = vsel %vm3157_vm14, %v1225_v44, %v1239_v42  ;;  %v885_v38 = vadd.f32 %v884_v6, %v798_v41  ;;  %v898_v5 = vmul.f32 %v2709_v22, %v3158_v15  ;;  %v1317_v34 = vld [vmem:[%s2989_s4 + $0x18] sm:$0xff]  ;;  %v1315_v6 = vld [vmem:[%s2989_s4 + $0x8] sm:$0xff] }
 0x26e   :  { %v900_v7 = vmul.f32 %v2714_v29, %v829_v17  ;;  %vm3159_vm13 = vcmask 1047559   ;;  %v853_v47 = vadd.f32 %v852_v18, %v851_v28  ;;  %v874_v20 = vrot.slane %v873_v32, 2  ;;  %v1494_v42 = vld [vmem:[%s2990_s6 + $0x8] sm:$0xff] }
 0x26f   :  { %v1241_v24 = vsel %vm3159_vm13, %v1227_v11, %v1240_v57  ;;  %v863_v23 = vadd.f32 %v862_v55, %v861_v45  ;;  %v3160_v33 = vmov 0   ;;  %v886_v61 = vrot.slane %v885_v38, 2  ;;  %v1318_v45 = vld [vmem:[%s2989_s4 + $0x20] sm:$0xff] }
 0x270   :  { %1285 = vmatprep.mubr.bf16.mxu1 %v3160_v33  ;;  %v1243_v27 = vpack.c.b16 %v1241_v24, %v1241_v24  ;;  %v902_v10 = vmul.f32 %v2718_v51, %v841_v52  ;;  %v1042_v43 = vpack.c.bf16 %v896_v2, %v896_v2  ;;  %v875_v46 = vadd.f32 %v874_v20, %v873_v32  ;;  %v1316_v52 = vld [vmem:[%s2989_s4 + $0x10] sm:$0xff]  ;;  %v1493_v2 = vld [vmem:[%s2990_s6] sm:$0xff]  ;;  %v3171_v20 = vld [vmem:[#allocation19_spill] sm:$0xff] }
 0x271   :  { %v864_v39 = vrot.slane %v863_v23, 1  ;;  %v904_v9 = vmul.f32 %v2722_v8, %v853_v47  ;;  %v1044_v16 = vpack.c.bf16 %v898_v5, %v898_v5  ;;  %vm3161_vm11 = vcmask 1043456   ;;  %1344 = vperm.xlu1 %1921, %v1318_v45   ;;  %1359 = vperm.xlu0 %1920, %v1321_v31  }
 0x272   :  { %1749 = vmatprep.subr.msk.bf16.mxu1 %vm3161_vm11, %v1243_v27  ;;  %v887_v22 = vadd.f32 %v886_v61, %v885_v38  ;;  %v1046_v29 = vpack.c.bf16 %v900_v7, %v900_v7  ;;  %v1048_v36 = vpack.c.bf16 %v902_v10, %v902_v10  ;;  %v1212_v3 = vunpack.c.l.b16 %v1042_v43  ;;  %v3172_v61 = vld [vmem:[#allocation21_spill] sm:$0xff] }
 0x273   :  { %v865_v4 = vadd.f32 %v864_v39, %v863_v23  ;;  %v876_v25 = vrot.slane %v875_v46, 1  ;;  %v1050_v49 = vpack.c.bf16 %v904_v9, %v904_v9  ;;  %v1214_v26 = vunpack.c.l.b16 %v1044_v16  ;;  %v3173_v39 = vld [vmem:[#allocation18_spill] sm:$0xff]  ;;  %v3174_v9 = vld [vmem:[#allocation20_spill] sm:$0xff] }
 0x274   :  { %v888_v59 = vrot.slane %v887_v22, 1  ;;  %v1216_v48 = vunpack.c.l.b16 %v1046_v29  ;;  %v1218_v44 = vunpack.c.l.b16 %v1048_v36  ;;  %vm3162_vm15 = vcmask 1041409  }
 0x275   :  { %v877_v51 = vadd.f32 %v876_v25, %v875_v46  ;;  %v906_v11 = vmul.f32 %v2725_v30, %v865_v4  ;;  %v1228_v0 = vsel %vm3162_vm15, %v1214_v26, %v1212_v3  ;;  %v1220_v1 = vunpack.c.l.b16 %v1050_v49  ;;  %1349 = vperm.xlu1 %1921, %v1319_v13   ;;  %1334 = vperm.xlu0 %1920, %v1316_v52   ;;  %v1927_v49 = vld [vmem:[%s2988_s3] sm:$0xff]  }
 0x276   :  { %v889_v8 = vadd.f32 %v888_v59, %v887_v22  ;;  %vm3163_vm14 = vcmask 1042434   ;;  %vm3164_vm13 = vcmask 1043459   ;;  %vm3165_vm11 = vcmask 1044484  }
 0x277   :  { %v1229_v41 = vsel %vm3163_vm14, %v1216_v48, %v1228_v0  ;;  %v908_v21 = vmul.f32 %v2729_v35, %v877_v51  ;;  %v1052_v60 = vpack.c.bf16 %v906_v11, %v906_v11  ;;  %vm3166_vm12 = vcmask 1045509  }
 0x278   :  { %v1230_v63 = vsel %vm3164_vm13, %v1218_v44, %v1229_v41  ;;  %v910_v58 = vmul.f32 %v2732_v14, %v889_v8  ;;  %vm3167_vm15 = vcmask 1046534   ;;  %vm3169_vm14 = vcmask 1043456   ;;  %v1926_v14 = vld [vmem:[%s2987_s2] sm:$0xff]   ;;  %v1928_v44 = vld [vmem:[%s2988_s3 + $0x8] sm:$0xff]  }
 0x279   :  { %v1231_v19 = vsel %vm3165_vm11, %v1220_v1, %v1230_v63  ;;  %v1054_v17 = vpack.c.bf16 %v908_v21, %v908_v21  ;;  %v1222_v62 = vunpack.c.l.b16 %v1052_v60  ;;  %vm3170_vm13 = vcmask 64512   ;;  %1339 = vperm.xlu1 %1921, %v1317_v34   ;;  %1324 = vperm.xlu0 %1920, %v1314_v50   ;;  %v1929_v1 = vld [vmem:[%s2988_s3 + $0x10] sm:$0xff]  }
 0x27a   :  { %v1056_v53 = vpack.c.bf16 %v910_v58, %v910_v58  ;;  %v3175_v26 = vmov 0.0625   ;;  %v1930_v58 = vld [vmem:[%s2988_s3 + $0x18] sm:$0xff]  }
 0x27b   :  { %v1224_v37 = vunpack.c.l.b16 %v1054_v17  ;;  %v1232_v30 = vsel %vm3166_vm12, %v1222_v62, %v1231_v19  ;;  %v3189_v19 = vld [vmem:[#allocation12_spill] sm:$0xff]  ;;  %v3194_v17 = vld [vmem:[#allocation14_spill] sm:$0xff]  ;;  %v3196_v62 = vld [vmem:[#allocation15_spill] sm:$0xff] }
 0x27c   :  { %v1226_v54 = vunpack.c.l.b16 %v1056_v53  ;;  %v3198_v53 = vld [vmem:[#allocation16_spill] sm:$0xff] }
 0x27d   :  { %v1233_v56 = vsel %vm3167_vm15, %v1224_v37, %v1232_v30  ;;  %1329 = vperm.xlu1 %1921, %v1315_v6   ;;  %1497 = vperm.xlu0 %1920, %v1493_v2   ;;  %v3200_v37 = vld [vmem:[#allocation17_spill] sm:$0xff] }
 0x27e   :  { %v1234_v28 = vsel %vm3168_vm10, %v1226_v54, %v1233_v56  ;;  %vm3177_vm10 = vcmask 130048  }
 0x27f   :  { %v1242_v12 = vpack.c.b16 %v1234_v28, %v1234_v28 }
 0x281   :  { %v1248_v35 = vsel %vm3169_vm14, %v1242_v12, 0  ;;  %1502 = vperm.xlu1 %1921, %v1494_v42  }
 0x282   :  { %1268 = vmatpush1.bf16.msra.mxu1 %v1248_v35 }
 0x285   :  { %1750 = vmatmul.mubr.msk.bf16.vlgmr.msra.gmra.mxu1 %vm3170_vm13, %v1926_v14 }
 0x286   :  { %1426 = vmatprep.mubr.bf16.mxu1 %v3160_v33 }
 0x2e7   :  { %v1355_v34 = vpop.permute.xlu0 %1354 }
 0x2ec   :  { %v1345_v31 = vpop.permute.xlu1 %1344  ;;  %v1360_v42 = vpop.permute.xlu0 %1359 }
 0x2f0   :  { %v1350_v50 = vpop.permute.xlu1 %1349 }
 0x32b   :  { %v1182_v18 = vpop.f32.mrf.mxu1 }
 0x32d   :  { %v1184_v55 = vpop.f32.mrf.mxu1 }
 0x32f   :  { %v1186_v32 = vpop.f32.mrf.mxu1 }
 0x331   :  { %v1188_v57 = vpop.f32.mrf.mxu1 }
 0x345   :  { %v1287_v38 = vpop.f32.mrf.mxu1 }
 0x346   :  { %v1288_v7 = vadd.f32 %v1287_v38, %v1182_v18 }
 0x347   :  { %v1289_v15 = vpop.f32.mrf.mxu1 }
 0x348   :  { %v1290_v5 = vadd.f32 %v1289_v15, %v1184_v55  ;;  %v1296_v46 = vadd.f32 %v1288_v7, %v3173_v39  ;;  %v1340_v15 = vpop.permute.xlu1 %1339 }
 0x349   :  { %v1291_v24 = vpop.f32.mrf.mxu1 }
 0x34a   :  { %v1292_v47 = vadd.f32 %v1291_v24, %v1186_v32  ;;  %v1297_v27 = vadd.f32 %v1290_v5, %v3171_v20  ;;  %v1300_v3 = vmax.f32 %v1296_v46, 0.0 }
 0x34b   :  { %v1293_v23 = vpop.f32.mrf.mxu1 }
 0x34c   :  { %v1298_v10 = vadd.f32 %v1292_v47, %v3172_v61  ;;  %v1294_v43 = vadd.f32 %v1293_v23, %v1188_v57  ;;  %v1301_v29 = vmax.f32 %v1297_v27, 0.0  ;;  %v1335_v23 = vpop.permute.xlu0 %1334 }
 0x34e   :  { %v1299_v16 = vadd.f32 %v1294_v43, %v3174_v9  ;;  %v1302_v22 = vmax.f32 %v1298_v10, 0.0 }
 0x350   :  { %v1303_v36 = vmax.f32 %v1299_v16, 0.0  ;;  %v1312_v25 = vpack.c.bf16 %v1302_v22, %v1300_v3 }
 0x352   :  { %v1313_v4 = vpack.c.bf16 %v1303_v36, %v1301_v29  ;;  %v1330_v36 = vpop.permute.xlu1 %1329 }
 0x354   :  { %1408 = vmatprep.subr.bf16.mxu1 %v1313_v4 }
 0x355   :  { %1409 = vmatpush1.bf16.msra.mxu1 %v1312_v25 }
 0x356   :  { %1871 = vmatprep.subr.msk.mxu1 %vm2077_vm0, %v3175_v26 }
 0x358   :  { %1755 = vmatmul.mubr.msk.bf16.vlgmr.msra.gmra.mxu1 %vm3177_vm10, %v1927_v49 }
 0x359   :  { %1436 = vmatprep.mubr.bf16.mxu1 %v3160_v33  ;;  %1872 = vmatpush3.msk.msra.mxu1 %vm2077_vm0, %v3175_v26  ;;  %vm3181_vm0 = vmmov %vm3177_vm10 }
 0x35a   :  { %1873 = vmatprep.subr.msk.mxu1 %vm2081_vm1, %v3175_v26 }
 0x35b   :  { %1874 = vmatpush3.msk.msra.mxu1 %vm2081_vm1, %v3175_v26  ;;  %vm3186_vm1 = vmmov %vm3181_vm0 }
 0x35c   :  { %1875 = vmatprep.subr.msk.mxu1 %vm2093_vm2, %v3175_v26 }
 0x35d   :  { %1876 = vmatpush3.msk.msra.mxu1 %vm2093_vm2, %v3175_v26  ;;  %vm3190_vm2 = vnez %v3189_v19 }
 0x35e   :  { %1877 = vmatprep.subr.msk.mxu1 %vm2105_vm3, %v3175_v26 }
 0x35f   :  { %1878 = vmatpush3.msk.msra.mxu1 %vm2105_vm3, %v3175_v26 }
 0x360   :  { %1756 = vmatmul.mubr.msk.bf16.gmra.mxu1 %vm3181_vm0, %v1928_v44  ;;  %1879 = vmatprep.subr.msk.mxu1 %vm2117_vm4, %v3175_v26  ;;  %v1325_v44 = vpop.permute.xlu0 %1324 }
 0x361   :  { %1446 = vmatprep.mubr.bf16.mxu1 %v3160_v33  ;;  %1880 = vmatpush3.msk.msra.mxu1 %vm2117_vm4, %v3175_v26  ;;  %vm3193_vm4 = vmmov %vm3181_vm0 }
 0x362   :  { %1881 = vmatprep.subr.msk.mxu1 %vm2129_vm5, %v3175_v26 }
 0x363   :  { %1882 = vmatpush3.msk.msra.mxu1 %vm2129_vm5, %v3175_v26  ;;  %vm3195_vm5 = vnez %v3194_v17 }
 0x364   :  { %1883 = vmatprep.subr.msk.mxu1 %vm2141_vm6, %v3175_v26 }
 0x365   :  { %1884 = vmatpush3.msk.msra.mxu1 %vm2141_vm6, %v3175_v26  ;;  %vm3197_vm6 = vnez %v3196_v62 }
 0x366   :  { %1885 = vmatprep.subr.msk.mxu1 %vm2153_vm7, %v3175_v26 }
 0x367   :  { %1886 = vmatpush3.msk.msra.mxu1 %vm2153_vm7, %v3175_v26  ;;  %vm3199_vm7 = vnez %v3198_v53 }
 0x368   :  { %1757 = vmatmul.mubr.msk.bf16.gmra.mxu1 %vm3186_vm1, %v1929_v1  ;;  %1887 = vmatprep.subr.msk.mxu1 %vm2165_vm8, %v3175_v26 }
 0x369   :  { %1456 = vmatprep.mubr.bf16.mxu1 %v3160_v33  ;;  %1888 = vmatpush3.msk.msra.mxu1 %vm2165_vm8, %v3175_v26  ;;  %v3191_v33 = vld [vmem:[#allocation13_spill] sm:$0xff]  ;;  %vm3201_vm8 = vnez %v3200_v37 }
 0x36a   :  { %1889 = vmatprep.subr.msk.mxu1 %vm2177_vm9, %v3175_v26  ;;  %vm3192_vm3 = vnez %v3191_v33 }
 0x36b   :  { %1890 = vmatpush3.msk.msra.mxu1 %vm2177_vm9, %v3175_v26  ;;  %vm1510_vm9 = vcmask 523264  }
 0x36c   :  { %1891 = vmatprep.subr.msk.mxu1 %vm3190_vm2, %v3175_v26 }
 0x36d   :  { %1892 = vmatpush3.msk.msra.mxu1 %vm3190_vm2, %v3175_v26 }
 0x36e   :  { %1893 = vmatprep.subr.msk.mxu1 %vm3192_vm3, %v3175_v26 }
 0x36f   :  { %1894 = vmatpush3.msk.msra.mxu1 %vm3192_vm3, %v3175_v26 }
 0x370   :  { %1758 = vmatmul.mubr.msk.bf16.gmra.mxu1 %vm3193_vm4, %v1930_v58  ;;  %1895 = vmatprep.subr.msk.mxu1 %vm3195_vm5, %v3175_v26 }
 0x371   :  { %1896 = vmatpush3.msk.msra.mxu1 %vm3195_vm5, %v3175_v26 }
 0x372   :  { %1897 = vmatprep.subr.msk.mxu1 %vm3197_vm6, %v3175_v26 }
 0x373   :  { %1898 = vmatpush3.msk.msra.mxu1 %vm3197_vm6, %v3175_v26 }
 0x374   :  { %1899 = vmatprep.subr.msk.mxu1 %vm3199_vm7, %v3175_v26 }
 0x375   :  { %1900 = vmatpush3.msk.msra.mxu1 %vm3199_vm7, %v3175_v26 }
 0x376   :  { %1901 = vmatprep.subr.msk.mxu1 %vm3201_vm8, %v3175_v26 }
 0x377   :  { %1902 = vmatpush3.msk.msra.mxu1 %vm3201_vm8, %v3175_v26 }
 0x418   :  { %v1428_v30 = vpop.f32.mrf.mxu1 }
 0x419   :  { %v1429_v58 = vadd.f32 %v1428_v30, %v1325_v44 }
 0x41a   :  { %v1430_v54 = vpop.f32.mrf.mxu1 }
 0x41b   :  { %v1431_v0 = vadd.f32 %v1430_v54, %v1325_v44  ;;  %v1467_v53 = vmax.f32 %v1429_v58, 0.0  ;;  %v1931_v54 = vld [vmem:[%s2991_s5] sm:$0xff]  }
 0x41c   :  { %v1432_v56 = vpop.f32.mrf.mxu1 }
 0x41d   :  { %v1433_v8 = vadd.f32 %v1432_v56, %v1330_v36  ;;  %v1468_v19 = vmax.f32 %v1431_v0, 0.0  ;;  %v1498_v56 = vpop.permute.xlu0 %1497 }
 0x41e   :  { %v1434_v28 = vpop.f32.mrf.mxu1 }
 0x41f   :  { %v1435_v49 = vadd.f32 %v1434_v28, %v1330_v36  ;;  %v1469_v33 = vmax.f32 %v1433_v8, 0.0  ;;  %v2013_v36 = vld [vmem:[%s2985_s0] sm:$0xff] }
 0x420   :  { %v1438_v12 = vpop.f32.mrf.mxu1 }
 0x421   :  { %v1439_v48 = vadd.f32 %v1438_v12, %v1335_v23  ;;  %v1470_v21 = vmax.f32 %v1435_v49, 0.0  ;;  %v1485_v37 = vpack.c.bf16 %v1469_v33, %v1467_v53 }
 0x422   :  { %v1440_v35 = vpop.f32.mrf.mxu1 }
 0x423   :  { %v1441_v16 = vadd.f32 %v1440_v35, %v1335_v23  ;;  %v1471_v63 = vmax.f32 %v1439_v48, 0.0  ;;  %v1486_v62 = vpack.c.bf16 %v1470_v21, %v1468_v19  ;;  %v1503_v35 = vpop.permute.xlu1 %1502  ;;  %v2015_v21 = vld [vmem:[%s2985_s0 + $0x10] sm:$0xff] }
 0x424   :  { %v1442_v14 = vpop.f32.mrf.mxu1 }
 0x425   :  { %v1443_v3 = vadd.f32 %v1442_v14, %v1340_v15  ;;  %v1472_v11 = vmax.f32 %v1441_v16, 0.0 }
 0x426   :  { %v1444_v40 = vpop.f32.mrf.mxu1 }
 0x427   :  { %v1445_v61 = vadd.f32 %v1444_v40, %v1340_v15  ;;  %v1473_v1 = vmax.f32 %v1443_v3, 0.0  ;;  %v1690_v3 = vmul.f32 1000000.0, %v2013_v36 }
 0x428   :  { %v1448_v45 = vpop.f32.mrf.mxu1 }
 0x429   :  { %v1449_v46 = vadd.f32 %v1448_v45, %v1345_v31  ;;  %v1474_v26 = vmax.f32 %v1445_v61, 0.0  ;;  %v1487_v17 = vpack.c.bf16 %v1473_v1, %v1471_v63 }
 0x42a   :  { %v1450_v13 = vpop.f32.mrf.mxu1 }
 0x42b   :  { %v1451_v24 = vadd.f32 %v1450_v13, %v1345_v31  ;;  %v1475_v51 = vmax.f32 %v1449_v46, 0.0  ;;  %v1488_v60 = vpack.c.bf16 %v1474_v26, %v1472_v11 }
 0x42c   :  { %v1452_v52 = vpop.f32.mrf.mxu1 }
 0x42d   :  { %v1453_v20 = vadd.f32 %v1452_v52, %v1350_v50  ;;  %v1476_v22 = vmax.f32 %v1451_v24, 0.0 }
 0x42e   :  { %v1454_v6 = vpop.f32.mrf.mxu1 }
 0x42f   :  { %v1455_v32 = vadd.f32 %v1454_v6, %v1350_v50  ;;  %v1477_v4 = vmax.f32 %v1453_v20, 0.0 }
 0x430   :  { %v1458_v2 = vpop.f32.mrf.mxu1 }
 0x431   :  { %v1459_v5 = vadd.f32 %v1458_v2, %v1355_v34  ;;  %v1478_v10 = vmax.f32 %v1455_v32, 0.0  ;;  %v1489_v41 = vpack.c.bf16 %v1477_v4, %v1475_v51  ;;  %v2014_v51 = vld [vmem:[%s2985_s0 + $0x18] sm:$0xff] }
 0x432   :  { %v1460_v18 = vpop.f32.mrf.mxu1  ;;  %v1703_v11 = vmul.f32 1000000.0, %v2014_v51 }
 0x433   :  { %v1461_v57 = vadd.f32 %v1460_v18, %v1355_v34  ;;  %v1479_v9 = vmax.f32 %v1459_v5, 0.0  ;;  %v1490_v59 = vpack.c.bf16 %v1478_v10, %v1476_v22 }
 0x434   :  { %v1462_v55 = vpop.f32.mrf.mxu1 }
 0x435   :  { %v1463_v38 = vadd.f32 %v1462_v55, %v1360_v42  ;;  %v1480_v43 = vmax.f32 %v1461_v57, 0.0 }
 0x436   :  { %v1464_v7 = vpop.f32.mrf.mxu1 }
 0x437   :  { %v1465_v47 = vadd.f32 %v1464_v7, %v1360_v42  ;;  %v1481_v27 = vmax.f32 %v1463_v38, 0.0 }
 0x439   :  { %v1482_v39 = vmax.f32 %v1465_v47, 0.0  ;;  %v1491_v25 = vpack.c.bf16 %v1481_v27, %v1479_v9  ;;  %v2012_v9 = vld [vmem:[%s2985_s0 + $0x8] sm:$0xff] }
 0x43a   :  { %v1691_v16 = vmul.f32 1000000.0, %v2012_v9 }
 0x43b   :  { %v1492_v29 = vpack.c.bf16 %v1482_v39, %v1480_v43 }
 0x43d   :  { %1522 = vmatprep.subr.bf16.mxu0 %v1492_v29 }
 0x43e   :  { %1523 = vmatpush1.bf16.msra.mxu0 %v1491_v25 }
 0x43f   :  { %1524 = vmatprep.subr.bf16.mxu0 %v1490_v59 }
 0x442   :  { %1525 = vmatpush1.bf16.msra.mxu0 %v1489_v41 }
 0x443   :  { %1526 = vmatprep.subr.bf16.mxu0 %v1488_v60  ;;  %v1702_v60 = vmul.f32 1000000.0, %v2015_v21 }
 0x446   :  { %1527 = vmatpush1.bf16.msra.mxu0 %v1487_v17 }
 0x447   :  { %1528 = vmatprep.subr.bf16.mxu0 %v1486_v62 }
 0x44a   :  { %1529 = vmatpush1.bf16.msra.mxu0 %v1485_v37 }
 0x44d   :  { %1760 = vmatmul.mubr.msk.bf16.vlgmr.msra.gmra.mxu0 %vm1510_vm9, %v1931_v54 }
 0x50d   :  { %v1548_v28 = vpop.f32.mrf.mxu0 }
 0x50e   :  { %v1549_v30 = vadd.f32 %v1548_v28, %v1498_v56 }
 0x50f   :  { %v1550_v12 = vpop.f32.mrf.mxu0 }
 0x510   :  { %1903 = vmatprep.mubr.f32.mxu1 %v1549_v30  ;;  %v1557_v45 = vmul.f32 %v1549_v30, %v1549_v30  ;;  %v2955_v13 = vadd.f32 %v1550_v12, %v1498_v56 }
 0x511   :  { %v1552_v14 = vpop.f32.mrf.mxu0 }
 0x512   :  { %v1553_v40 = vadd.f32 %v1552_v14, %v1503_v35  ;;  %v1559_v6 = vmul.f32 %v2955_v13, %v2955_v13 }
 0x513   :  { %v1554_v34 = vpop.f32.mrf.mxu0 }
 0x514   :  { %1904 = vmatmul.mubr.f32.vlgmr.msra.gmra.mxu1 %v1553_v40  ;;  %v1558_v31 = vmul.f32 %v1553_v40, %v1553_v40  ;;  %v1555_v52 = vadd.f32 %v1554_v34, %v1503_v35 }
 0x515   :  { %1906 = vmatprep.mubr.f32.mxu1 %v1557_v45 }
 0x516   :  { %v1560_v50 = vmul.f32 %v1555_v52, %v1555_v52 }
 0x518   :  { %1907 = vmatmul.mubr.f32.gmra.mxu1 %v1558_v31 }
 0x519   :  { %1909 = vmatprep.mubr.f32.mxu1 %v2955_v13 }
 0x51c   :  { %1910 = vmatmul.mubr.f32.gmra.mxu1 %v1555_v52 }
 0x51d   :  { %1912 = vmatprep.mubr.f32.mxu1 %v1559_v6 }
 0x520   :  { %1913 = vmatmul.mubr.f32.gmra.mxu1 %v1560_v50 }
 0x5d4   :  { %v1905_v2 = vpop.f32.mrf.mxu1 }
 0x5d5   :  { %v1669_v18 = vmul.f32 %v1905_v2, %v1905_v2  ;;  %v1667_v22 = vsub.f32 %v1553_v40, %v1905_v2 }
 0x5d6   :  { %v1627_v42 = vpop.f32.mrf.mxu1 }
 0x5d7   :  { %v1668_v32 = vmul.f32 %v1627_v42, %v1627_v42  ;;  %v1666_v4 = vsub.f32 %v1549_v30, %v1627_v42 }
 0x5d8   :  { %v1908_v55 = vpop.f32.mrf.mxu1 }
 0x5d9   :  { %v1671_v57 = vsub.f32 %v1908_v55, %v1669_v18 }
 0x5da   :  { %v1637_v38 = vpop.f32.mrf.mxu1 }
 0x5db   :  { %v1673_v15 = vadd.f32 1e-05, %v1671_v57  ;;  %v1670_v5 = vsub.f32 %v1637_v38, %v1668_v32 }
 0x5dc   :  { %v1911_v7 = vpop.f32.mrf.mxu1 }
 0x5dd   :  { %2004 = vrsqrt.f32 %v1673_v15  ;;  %v1672_v24 = vadd.f32 1e-05, %v1670_v5  ;;  %v1681_v23 = vmul.f32 %v1911_v7, %v1911_v7  ;;  %v1679_v1 = vsub.f32 %v1555_v52, %v1911_v7 }
 0x5de   :  { %v1647_v47 = vpop.f32.mrf.mxu1 }
 0x5df   :  { %2006 = vrsqrt.f32 %v1672_v24  ;;  %v1680_v27 = vmul.f32 %v1647_v47, %v1647_v47  ;;  %v1678_v19 = vsub.f32 %v2955_v13, %v1647_v47 }
 0x5e0   :  { %v1914_v20 = vpop.f32.mrf.mxu1 }
 0x5e1   :  { %v1683_v61 = vsub.f32 %v1914_v20, %v1681_v23 }
 0x5e2   :  { %v1657_v10 = vpop.f32.mrf.mxu1 }
 0x5e3   :  { %v1685_v43 = vadd.f32 1e-05, %v1683_v61  ;;  %v1682_v39 = vsub.f32 %v1657_v10, %v1680_v27 }
 0x5e5   :  { %2008 = vrsqrt.f32 %v1685_v43  ;;  %v1684_v46 = vadd.f32 1e-05, %v1682_v39 }
 0x5e7   :  { %2010 = vrsqrt.f32 %v1684_v46 }
 0x5ea   :  { %v2005_v29 = vpop.eup %2004 }
 0x5eb   :  { %v1677_v25 = vmul.f32 %v2005_v29, %v1667_v22 }
 0x5ec   :  { %v2007_v49 = vpop.eup %2006 }
 0x5ed   :  { %v1693_v26 = vadd.f32 %v1691_v16, %v1677_v25  ;;  %v1676_v59 = vmul.f32 %v2007_v49, %v1666_v4 }
 0x5ef   :  { %v1695_v48 = vmax.f32 %v1693_v26, 0.0  ;;  %v1692_v44 = vadd.f32 %v1690_v3, %v1676_v59 }
 0x5f1   :  { %v1697_v0 = vmul.f32 1e-06, %v1695_v48  ;;  %v1694_v8 = vmax.f32 %v1692_v44, 0.0 }
 0x5f2   :  { %v2009_v41 = vpop.eup %2008 }
 0x5f3   :  { %v1699_v63 = vfloor.f32 %v1697_v0  ;;  %v1696_v58 = vmul.f32 1e-06, %v1694_v8  ;;  %v1689_v33 = vmul.f32 %v2009_v41, %v1679_v1 }
 0x5f4   :  { %v2011_v17 = vpop.eup %2010 }
 0x5f5   :  { %1701 = vst [vmem:[%s2992_s7 + $0x8] sm:$0xff] %v1699_v63  ;;  %v1698_v62 = vfloor.f32 %v1696_v58  ;;  %v1705_v53 = vadd.f32 %v1703_v11, %v1689_v33  ;;  %v1688_v37 = vmul.f32 %v2011_v17, %v1678_v19 }
 0x5f7   :  { %1700 = vst [vmem:[%s2992_s7] sm:$0xff] %v1698_v62  ;;  %v1707_v54 = vmax.f32 %v1705_v53, 0.0  ;;  %v1704_v56 = vadd.f32 %v1702_v60, %v1688_v37 }
 0x5f9   :  { %v1709_v28 = vmul.f32 1e-06, %v1707_v54  ;;  %v1706_v30 = vmax.f32 %v1704_v56, 0.0 }
 0x5fb   :  { %v1711_v12 = vfloor.f32 %v1709_v28  ;;  %v1708_v35 = vmul.f32 1e-06, %v1706_v30 }
 0x5fd   :  { %1778 = vst [vmem:[%s2992_s7 + $0x18] sm:$0xff] %v1711_v12  ;;  %v1710_v14 = vfloor.f32 %v1708_v35 }
 0x5ff   :  { %1777 = vst [vmem:[%s2992_s7 + $0x10] sm:$0xff] %v1710_v14 }

</bundles_post_ra>
